<compile_context>
chip_gen: v7x
topology: tpu7x:2x2x1
jax: 0.10.0
libtpu: 0.0.40
codegen_flags: <defaults>
</compile_context>

<pallas_src>
import jax
import jax.numpy as jnp
from jax.experimental import pallas as pl
from jax.experimental.pallas import tpu as pltpu

HIDDEN1_UNITS = 300
HIDDEN2_UNITS = 600
action_size = 3
state_size = 29

# Padded, lane-aligned dims.
S_PAD = 128      # state   29 -> 128
H1_PAD = 384     # hidden1 300 -> 384 (action folded into lanes 300..302)
H2_PAD = 640     # hidden2 600 -> 640
OUT_PAD = 128    # output    3 -> 128


def _round_up(x, m):
    return (x + m - 1) // m * m


def _num_tensorcores():
    """Best-effort TensorCore count per JAX device (2 on megacore / v7x)."""
    try:
        d = jax.devices()[0]
        for attr in ("num_cores", "core_count"):
            n = getattr(d, attr, None)
            if isinstance(n, int) and n > 0:
                return n
        kind = str(getattr(d, "device_kind", "")).lower()
        if ("v4" in kind) or ("v5p" in kind) or ("7" in kind):
            return 2
    except Exception:
        pass
    return 1


def _pick_batch_tile(B, n_cores):
    """Batch tile: >= 2*n_cores tiles on multi-TC chips (so the "parallel"
    grid axis is actually shardable), large tiles on single-TC chips, and a
    tile count that minimizes padded rows."""
    if n_cores >= 2 and B > 32:
        max_tb, min_tiles = 256, 2 * n_cores
    else:
        max_tb, min_tiles = 512, 1
    n_tiles = max(min_tiles, pl.cdiv(B, max_tb))
    tb = _round_up(pl.cdiv(B, n_tiles), 16)
    return max(16, tb)


def critic_kernel(s_ref, a_ref,
                  w1w_ref, w1b_ref,
                  h1a1w_ref, h1a1b_ref,
                  h3w_ref, h3b_ref,
                  vw_ref, vb_ref,
                  out_ref):
    """One batch tile of the whole critic MLP (weights resident in VMEM).

    s_ref: [TB, 128] f32  -- padded state.
    a_ref: [TB, 384] bf16 -- action pre-placed in lanes 300..302, zero elsewhere.
    Middle matmuls are bf16 on the MXU with f32 accumulation; the tiny first
    and last matmuls stay f32.
    """
    # layer 1 (f32, K=29 padded to 128): relu(s @ W1 + b1)            [TB, 384]
    w1 = jnp.maximum(
        jnp.dot(s_ref[...], w1w_ref[...], preferred_element_type=jnp.float32)
        + w1b_ref[...], 0.0)

    # Fold the action into H1's zero-padded lanes: lanes 300..383 of w1 are
    # exactly 0 (zero-padded weight columns / bias + relu), so this plain add
    # places the action without touching live data -- no concat, K stays 384.
    h2_in = (w1 + a_ref[...].astype(jnp.float32)).astype(jnp.bfloat16)   # [TB, 384]

    # fused h1 + a1:  h2 = h2_in @ [[h1_w (rows 0..299)], [a1_w (rows 300..302)]]
    #                      + (h1_b + a1_b)
    h2 = (jnp.dot(h2_in, h1a1w_ref[...], preferred_element_type=jnp.float32)
          + h1a1b_ref[...])                                              # [TB, 640]

    # layer 3: relu(h2 @ h3_w + h3_b)  (bf16 MXU, f32 accumulate)
    h3 = jnp.maximum(
        jnp.dot(h2.astype(jnp.bfloat16), h3w_ref[...],
                preferred_element_type=jnp.float32) + h3b_ref[...], 0.0)  # [TB, 640]

    # output layer (f32, N=3 padded to 128)
    out_ref[...] = (
        jnp.dot(h3, vw_ref[...], preferred_element_type=jnp.float32) + vb_ref[...])


def init_params(key):
    """PyTorch-style Linear init: U(-1/sqrt(fan_in), 1/sqrt(fan_in)).

    Weights stored as [in_features, out_features] so the kernel does x @ W.
    """
    def linear(k, fan_in, fan_out):
        kw, kb = jax.random.split(k)
        bound = 1.0 / jnp.sqrt(jnp.float32(fan_in))
        w = jax.random.uniform(kw, (fan_in, fan_out), jnp.float32, -bound, bound)
        b = jax.random.uniform(kb, (fan_out,), jnp.float32, -bound, bound)
        return w, b

    ks = jax.random.split(key, 5)
    p = {}
    p["w1_w"], p["w1_b"] = linear(ks[0], state_size, HIDDEN1_UNITS)
    p["a1_w"], p["a1_b"] = linear(ks[1], action_size, HIDDEN2_UNITS)
    p["h1_w"], p["h1_b"] = linear(ks[2], HIDDEN1_UNITS, HIDDEN2_UNITS)
    p["h3_w"], p["h3_b"] = linear(ks[3], HIDDEN2_UNITS, HIDDEN2_UNITS)
    p["V_w"], p["V_b"] = linear(ks[4], HIDDEN2_UNITS, action_size)
    return p


def prepare_params(p):
    """Pad, fuse and cast the weights ONCE (reused across forward calls).

    Padded regions MUST stay exactly zero: the a1 lane-fold relies on it.
    """
    def pad_w(w, r, c, dtype):
        out = jnp.zeros((r, c), dtype)
        return out.at[: w.shape[0], : w.shape[1]].set(w.astype(dtype))

    def pad_b(b, c):
        out = jnp.zeros((1, c), jnp.float32)
        return out.at[0, : b.shape[0]].set(b.astype(jnp.float32))

    # layer 1 kept in f32 (tiny matmul; keeps the state path exact).
    w1w = pad_w(p["w1_w"], S_PAD, H1_PAD, jnp.float32)
    w1b = pad_b(p["w1_b"], H1_PAD)

    # Fused h1/a1 weight: h1_w in rows 0..299, a1_w folded into the otherwise
    # zero rows 300..302 (no separate 128-row action block -> K = 384).
    h1a1w = jnp.zeros((H1_PAD, H2_PAD), jnp.bfloat16)
    h1a1w = h1a1w.at[:HIDDEN1_UNITS, :HIDDEN2_UNITS].set(
        p["h1_w"].astype(jnp.bfloat16))
    h1a1w = h1a1w.at[HIDDEN1_UNITS:HIDDEN1_UNITS + action_size,
                     :HIDDEN2_UNITS].set(p["a1_w"].astype(jnp.bfloat16))
    h1a1b = pad_b(p["h1_b"] + p["a1_b"], H2_PAD)

    h3w = pad_w(p["h3_w"], H2_PAD, H2_PAD, jnp.bfloat16)
    h3b = pad_b(p["h3_b"], H2_PAD)

    # output layer kept in f32 (tiny matmul; keeps the critic value exact-ish).
    vw = pad_w(p["V_w"], H2_PAD, OUT_PAD, jnp.float32)
    vb = pad_b(p["V_b"], OUT_PAD)

    return (w1w, w1b, h1a1w, h1a1b, h3w, h3b, vw, vb)


@jax.jit
def critic_forward(s, a, packed):
    """s: [B, 29] f32, a: [B, 3] f32, packed: prepare_params(...) -> [B, 3] f32."""
    B = s.shape[0]
    TB = _pick_batch_tile(B, _num_tensorcores())
    Bp = _round_up(B, TB)

    # State: single pad to [Bp, 128] f32 (layer 1 runs in f32).
    s_pad = jnp.pad(s.astype(jnp.float32),
                    ((0, Bp - B), (0, S_PAD - state_size)))
    # Action: single pad placing it in lanes 300..302 of a [Bp, 384] bf16 slab
    # (H1's guaranteed-zero lanes), so the in-kernel fold is a plain add.
    a_slab = jnp.pad(a.astype(jnp.bfloat16),
                     ((0, Bp - B),
                      (HIDDEN1_UNITS, H1_PAD - HIDDEN1_UNITS - action_size)))

    # Weights: full-array blocks, constant index_map -> resident across tiles.
    weight_specs = [pl.BlockSpec(w.shape, lambda i: (0, 0)) for w in packed]
    in_specs = ([pl.BlockSpec((TB, S_PAD), lambda i: (i, 0)),
                 pl.BlockSpec((TB, H1_PAD), lambda i: (i, 0))]
                + weight_specs)
    out_spec = pl.BlockSpec((TB, OUT_PAD), lambda i: (i, 0))

    out_padded = pl.pallas_call(
        critic_kernel,
        out_shape=jax.ShapeDtypeStruct((Bp, OUT_PAD), jnp.float32),
        grid=(Bp // TB,),
        in_specs=in_specs,
        out_specs=out_spec,
        compiler_params=pltpu.CompilerParams(
            dimension_semantics=("parallel",),   # independent batch tiles
            vmem_limit_bytes=16 << 20,           # resident data << 16 MiB
        ),
    )(s_pad, a_slab, *packed)

    return out_padded[:B, :action_size]


def critic_forward_ref(s, a, p):
    w1 = jnp.maximum(s @ p["w1_w"] + p["w1_b"], 0.0)
    a1 = a @ p["a1_w"] + p["a1_b"]
    h1 = w1 @ p["h1_w"] + p["h1_b"]
    h2 = h1 + a1
    h3 = jnp.maximum(h2 @ p["h3_w"] + p["h3_b"], 0.0)
    return h3 @ p["V_w"] + p["V_b"]


if __name__ == "__main__":
    key = jax.random.PRNGKey(0)
    kp, ks, ka = jax.random.split(key, 3)

    params = init_params(kp)
    packed = prepare_params(params)   # pad / fuse / cast weights once

    ok = True
    for B in (8, 40):                 # small batch + a batch that needs padding
        ksb, kab = jax.random.fold_in(ks, B), jax.random.fold_in(ka, B)
        s = jax.random.normal(ksb, (B, state_size), jnp.float32)
        a = jax.random.normal(kab, (B, action_size), jnp.float32)

        out = jax.block_until_ready(critic_forward(s, a, packed))
        ref = critic_forward_ref(s, a, params)   # f32 reference

        assert out.shape == (B, action_size), out.shape
        # bf16 middle layers with f32 accumulation -> loose tolerance vs f32 ref.
        err = float(jnp.max(jnp.abs(out - ref)))
        assert jnp.allclose(out, ref, rtol=5e-2, atol=5e-2), err
        ok = ok and True

    if ok:
        print("KERNEL_OK")
</pallas_src>

<mosaic_0001>
module attributes {stable_mosaic.version = 11 : i64} {
  func.func @critic_kernel(%arg0: i32, %arg1: memref<16x128xf32, #tpu.memory_space<vmem>>, %arg2: memref<16x384xbf16, #tpu.memory_space<vmem>>, %arg3: memref<128x384xf32, #tpu.memory_space<vmem>>, %arg4: memref<1x384xf32, #tpu.memory_space<vmem>>, %arg5: memref<384x640xbf16, #tpu.memory_space<vmem>>, %arg6: memref<1x640xf32, #tpu.memory_space<vmem>>, %arg7: memref<640x640xbf16, #tpu.memory_space<vmem>>, %arg8: memref<1x640xf32, #tpu.memory_space<vmem>>, %arg9: memref<640x128xf32, #tpu.memory_space<vmem>>, %arg10: memref<1x128xf32, #tpu.memory_space<vmem>>, %arg11: memref<16x128xf32, #tpu.memory_space<vmem>>) attributes {dimension_semantics = [#tpu.dimension_semantics<parallel>], iteration_bounds = array<i64: 1>, scalar_prefetch = 0 : i64, scratch_operands = 0 : i64, tpu.core_type = #tpu.core_type<tc>, window_params = [{transform_indices = @transform_0, window_bounds = array<i64: 16, 128>}, {transform_indices = @transform_1, window_bounds = array<i64: 16, 384>}, {pipeline_mode = #tpu.pipeline_mode<synchronous>, transform_indices = @transform_2, window_bounds = array<i64: 128, 384>}, {pipeline_mode = #tpu.pipeline_mode<synchronous>, transform_indices = @transform_3, window_bounds = array<i64: 1, 384>}, {pipeline_mode = #tpu.pipeline_mode<synchronous>, transform_indices = @transform_4, window_bounds = array<i64: 384, 640>}, {pipeline_mode = #tpu.pipeline_mode<synchronous>, transform_indices = @transform_5, window_bounds = array<i64: 1, 640>}, {pipeline_mode = #tpu.pipeline_mode<synchronous>, transform_indices = @transform_6, window_bounds = array<i64: 640, 640>}, {pipeline_mode = #tpu.pipeline_mode<synchronous>, transform_indices = @transform_7, window_bounds = array<i64: 1, 640>}, {pipeline_mode = #tpu.pipeline_mode<synchronous>, transform_indices = @transform_8, window_bounds = array<i64: 640, 128>}, {pipeline_mode = #tpu.pipeline_mode<synchronous>, transform_indices = @transform_9, window_bounds = array<i64: 1, 128>}, {transform_indices = @transform_10, window_bounds = array<i64: 16, 128>}]} {
    %c0 = arith.constant 0 : index
    %c0_0 = arith.constant 0 : index
    %0 = vector.load %arg1[%c0, %c0_0] : memref<16x128xf32, #tpu.memory_space<vmem>>, vector<16x128xf32>
    %c0_1 = arith.constant 0 : index
    %c0_2 = arith.constant 0 : index
    %1 = vector.load %arg3[%c0_1, %c0_2] : memref<128x384xf32, #tpu.memory_space<vmem>>, vector<128x384xf32>
    %cst = arith.constant dense<0.000000e+00> : vector<16x384xf32>
    %2 = tpu.matmul %0, %1, %cst {dimension_numbers = #tpu.dot_dimension_numbers<[1], [0], [0], [1], [0, 0, 1, 1], [], []>} : vector<16x128xf32>, vector<128x384xf32>, vector<16x384xf32> -> vector<16x384xf32>
    %c0_3 = arith.constant 0 : index
    %c0_4 = arith.constant 0 : index
    %3 = vector.load %arg4[%c0_3, %c0_4] : memref<1x384xf32, #tpu.memory_space<vmem>>, vector<1x384xf32>
    %4 = vector.broadcast %3 : vector<1x384xf32> to vector<16x384xf32>
    %5 = arith.addf %2, %4 : vector<16x384xf32>
    %cst_5 = arith.constant 0.000000e+00 : f32
    %6 = vector.broadcast %cst_5 : f32 to vector<16x384xf32>
    %7 = arith.maximumf %5, %6 : vector<16x384xf32>
    %c0_6 = arith.constant 0 : index
    %c0_7 = arith.constant 0 : index
    %8 = vector.load %arg2[%c0_6, %c0_7] : memref<16x384xbf16, #tpu.memory_space<vmem>>, vector<16x384xbf16>
    %9 = arith.extf %8 : vector<16x384xbf16> to vector<16x384xf32>
    %10 = arith.addf %7, %9 : vector<16x384xf32>
    %11 = arith.truncf %10 : vector<16x384xf32> to vector<16x384xbf16>
    %c0_8 = arith.constant 0 : index
    %c0_9 = arith.constant 0 : index
    %12 = vector.load %arg5[%c0_8, %c0_9] : memref<384x640xbf16, #tpu.memory_space<vmem>>, vector<384x640xbf16>
    %cst_10 = arith.constant dense<0.000000e+00> : vector<16x640xf32>
    %13 = tpu.matmul %11, %12, %cst_10 {dimension_numbers = #tpu.dot_dimension_numbers<[1], [0], [0], [1], [0, 0, 1, 1], [], []>} : vector<16x384xbf16>, vector<384x640xbf16>, vector<16x640xf32> -> vector<16x640xf32>
    %c0_11 = arith.constant 0 : index
    %c0_12 = arith.constant 0 : index
    %14 = vector.load %arg6[%c0_11, %c0_12] : memref<1x640xf32, #tpu.memory_space<vmem>>, vector<1x640xf32>
    %15 = vector.broadcast %14 : vector<1x640xf32> to vector<16x640xf32>
    %16 = arith.addf %13, %15 : vector<16x640xf32>
    %17 = arith.truncf %16 : vector<16x640xf32> to vector<16x640xbf16>
    %c0_13 = arith.constant 0 : index
    %c0_14 = arith.constant 0 : index
    %18 = vector.load %arg7[%c0_13, %c0_14] : memref<640x640xbf16, #tpu.memory_space<vmem>>, vector<640x640xbf16>
    %cst_15 = arith.constant dense<0.000000e+00> : vector<16x640xf32>
    %19 = tpu.matmul %17, %18, %cst_15 {dimension_numbers = #tpu.dot_dimension_numbers<[1], [0], [0], [1], [0, 0, 1, 1], [], []>} : vector<16x640xbf16>, vector<640x640xbf16>, vector<16x640xf32> -> vector<16x640xf32>
    %c0_16 = arith.constant 0 : index
    %c0_17 = arith.constant 0 : index
    %20 = vector.load %arg8[%c0_16, %c0_17] : memref<1x640xf32, #tpu.memory_space<vmem>>, vector<1x640xf32>
    %21 = vector.broadcast %20 : vector<1x640xf32> to vector<16x640xf32>
    %22 = arith.addf %19, %21 : vector<16x640xf32>
    %cst_18 = arith.constant 0.000000e+00 : f32
    %23 = vector.broadcast %cst_18 : f32 to vector<16x640xf32>
    %24 = arith.maximumf %22, %23 : vector<16x640xf32>
    %c0_19 = arith.constant 0 : index
    %c0_20 = arith.constant 0 : index
    %25 = vector.load %arg9[%c0_19, %c0_20] : memref<640x128xf32, #tpu.memory_space<vmem>>, vector<640x128xf32>
    %cst_21 = arith.constant dense<0.000000e+00> : vector<16x128xf32>
    %26 = tpu.matmul %24, %25, %cst_21 {dimension_numbers = #tpu.dot_dimension_numbers<[1], [0], [0], [1], [0, 0, 1, 1], [], []>} : vector<16x640xf32>, vector<640x128xf32>, vector<16x128xf32> -> vector<16x128xf32>
    %c0_22 = arith.constant 0 : index
    %c0_23 = arith.constant 0 : index
    %27 = vector.load %arg10[%c0_22, %c0_23] : memref<1x128xf32, #tpu.memory_space<vmem>>, vector<1x128xf32>
    %28 = vector.broadcast %27 : vector<1x128xf32> to vector<16x128xf32>
    %29 = arith.addf %26, %28 : vector<16x128xf32>
    %c0_24 = arith.constant 0 : index
    %c0_25 = arith.constant 0 : index
    %30 = vector.load %arg11[%c0_24, %c0_25] : memref<16x128xf32, #tpu.memory_space<vmem>>, vector<16x128xf32>
    tpu.vector_store %arg11[%c0_24, %c0_25], %29 {strides = array<i32>} : memref<16x128xf32, #tpu.memory_space<vmem>>, vector<16x128xf32>,
    return
  }
  func.func @transform_0(%arg0: i32) -> (i32, i32) {
    %c0_i32 = arith.constant 0 : i32
    %c0_i32_0 = arith.constant 0 : i32
    return %arg0, %c0_i32 : i32, i32
  }
  func.func @transform_1(%arg0: i32) -> (i32, i32) {
    %c0_i32 = arith.constant 0 : i32
    %c0_i32_0 = arith.constant 0 : i32
    return %arg0, %c0_i32 : i32, i32
  }
  func.func @transform_2(%arg0: i32) -> (i32, i32) {
    %c0_i32 = arith.constant 0 : i32
    %c0_i32_0 = arith.constant 0 : i32
    %c0_i32_1 = arith.constant 0 : i32
    return %c0_i32, %c0_i32_0 : i32, i32
  }
  func.func @transform_3(%arg0: i32) -> (i32, i32) {
    %c0_i32 = arith.constant 0 : i32
    %c0_i32_0 = arith.constant 0 : i32
    %c0_i32_1 = arith.constant 0 : i32
    return %c0_i32, %c0_i32_0 : i32, i32
  }
  func.func @transform_4(%arg0: i32) -> (i32, i32) {
    %c0_i32 = arith.constant 0 : i32
    %c0_i32_0 = arith.constant 0 : i32
    %c0_i32_1 = arith.constant 0 : i32
    return %c0_i32, %c0_i32_0 : i32, i32
  }
  func.func @transform_5(%arg0: i32) -> (i32, i32) {
    %c0_i32 = arith.constant 0 : i32
    %c0_i32_0 = arith.constant 0 : i32
    %c0_i32_1 = arith.constant 0 : i32
    return %c0_i32, %c0_i32_0 : i32, i32
  }
  func.func @transform_6(%arg0: i32) -> (i32, i32) {
    %c0_i32 = arith.constant 0 : i32
    %c0_i32_0 = arith.constant 0 : i32
    %c0_i32_1 = arith.constant 0 : i32
    return %c0_i32, %c0_i32_0 : i32, i32
  }
  func.func @transform_7(%arg0: i32) -> (i32, i32) {
    %c0_i32 = arith.constant 0 : i32
    %c0_i32_0 = arith.constant 0 : i32
    %c0_i32_1 = arith.constant 0 : i32
    return %c0_i32, %c0_i32_0 : i32, i32
  }
  func.func @transform_8(%arg0: i32) -> (i32, i32) {
    %c0_i32 = arith.constant 0 : i32
    %c0_i32_0 = arith.constant 0 : i32
    %c0_i32_1 = arith.constant 0 : i32
    return %c0_i32, %c0_i32_0 : i32, i32
  }
  func.func @transform_9(%arg0: i32) -> (i32, i32) {
    %c0_i32 = arith.constant 0 : i32
    %c0_i32_0 = arith.constant 0 : i32
    %c0_i32_1 = arith.constant 0 : i32
    return %c0_i32, %c0_i32_0 : i32, i32
  }
  func.func @transform_10(%arg0: i32) -> (i32, i32) {
    %c0_i32 = arith.constant 0 : i32
    %c0_i32_0 = arith.constant 0 : i32
    return %arg0, %c0_i32 : i32, i32
  }
}

</mosaic_0001>

<bundles_post_ra>
// kernel: critic_forward.1
= control target key start
LH: loop header
LB: loop body
LE: loop exit
PB: predicated region body
PF: predicated region fallthrough
CT: control target
= control target key end

     0   :  { %15 = vsyncpa [#allocation3], 0  ;;  %s5066_s0 = inlined_call_operand.vmem [shape: f32[16,128], index: 0, kind: input, shape index: {}]   ;;  %s5067_s1 = inlined_call_operand.vmem [shape: bf16[16,384], index: 1, kind: input, shape index: {}]   ;;  %s5068_s2 = inlined_call_operand.hbm [shape: f32[128,384], index: 2, kind: input, shape index: {}]   ;;  %s5069_s3 = inlined_call_operand.vmem [shape: f32[1,384], index: 3, kind: input, shape index: {}]   ;;  %s5070_s4 = inlined_call_operand.hbm [shape: bf16[384,640], index: 4, kind: input, shape index: {}]   ;;  %s5071_s5 = inlined_call_operand.vmem [shape: f32[1,640], index: 5, kind: input, shape index: {}]   ;;  %s5072_s6 = inlined_call_operand.hbm [shape: bf16[640,640], index: 6, kind: input, shape index: {}]   ;;  %s5073_s7 = inlined_call_operand.vmem [shape: f32[1,640], index: 7, kind: input, shape index: {}]   ;;  %s5074_s8 = inlined_call_operand.hbm [shape: f32[640,128], index: 8, kind: input, shape index: {}]   ;;  %s5075_s9 = inlined_call_operand.vmem [shape: f32[1,128], index: 9, kind: input, shape index: {}]   ;;  %s5076_s10 = inlined_call_operand.vmem [shape: f32[16,128], index: 10, kind: output, shape index: {}]  }
   0x1   :  { %16 = vsyncpa [#allocation5], 0 }
   0x2   :  { %17 = vsyncpa [#allocation8], 0  ;;  %s4790_s13 = smov [#allocation4]   ;;  %s4696_s17 = scalar_lea.hbm %s5070_s4, 15360 }
   0x3   :  { %s41_s14 = sshll.u32 %s4790_s13, 4  ;;  %p4697_p0 = scmp.ne.s32.totalorder %s5070_s4, %s4696_s17  ;;  %s42_s14 = int_to_ptr.vmem [resolvable:$true] %s41_s14 }
   0x4   :  { %p4700_p1 = scmp.lt.u32.totalorder %s4696_s17, %s5070_s4 }
   0x6   :  { %p4702_p2 = pnand %p4700_p1, %p4697_p0 }
   0x8   :  { %4705 = shalt.err (!%p4702_p2)
}
   0x9   :  { %s4706_s22 = scalar_lea.vmem %s42_s14, 15360  ;;  %p4711_p4 = scmp.lt.s32.totalorder %s42_s14, %s42_s14 }
   0xa   :  { %p4707_p3 = scmp.ne.s32.totalorder %s42_s14, %s4706_s22  ;;  %p4712_p5 = scmp.lt.s32.totalorder %s4706_s22, %s4706_s22 }
   0xc   :  { %p4713_p6 = por %p4712_p5, %p4711_p4 }
   0xe   :  { %p4714_p7 = pnand %p4713_p6, %p4707_p3 }
  0x10   :  { %4717 = shalt.err (!%p4714_p7)
}
  0x11   :  { %s4791_s23 = smov 320   ;;  %s4792_s24 = smov 20  }
  0x12   :  { %47 = dma.hbm_to_vmem [thread:$0]  %s5070_s4, 15360, %s42_s14, [#allocation5], %s4791_s23, %s4791_s23, %s4792_s24  }
  0x13   :  { %s4793_s27 = smov [#allocation2]   ;;  %s4718_s11 = scalar_lea.hbm %s5068_s2, 6144 }
  0x14   :  { %s27_s28 = sshll.u32 %s4793_s27, 4  ;;  %p4719_p8 = scmp.ne.s32.totalorder %s5068_s2, %s4718_s11  ;;  %s28_s28 = int_to_ptr.vmem [resolvable:$true] %s27_s28 }
  0x15   :  { %p4722_p9 = scmp.lt.u32.totalorder %s4718_s11, %s5068_s2 }
  0x17   :  { %p4724_p10 = pnand %p4722_p9, %p4719_p8 }
  0x19   :  { %4727 = shalt.err (!%p4724_p10)
}
  0x1a   :  { %s4728_s17 = scalar_lea.vmem %s28_s28, 6144  ;;  %p4733_p12 = scmp.lt.s32.totalorder %s28_s28, %s28_s28 }
  0x1b   :  { %p4729_p11 = scmp.ne.s32.totalorder %s28_s28, %s4728_s17  ;;  %p4734_p13 = scmp.lt.s32.totalorder %s4728_s17, %s4728_s17 }
  0x1d   :  { %p4735_p0 = por %p4734_p13, %p4733_p12 }
  0x1f   :  { %p4736_p1 = pnand %p4735_p0, %p4729_p11 }
  0x21   :  { %4739 = shalt.err (!%p4736_p1)
}
  0x22   :  { %s4794_s4 = smov 384   ;;  %s4795_s14 = smov 24  }
  0x23   :  { %33 = dma.hbm_to_vmem [thread:$0]  %s5068_s2, 6144, %s28_s28, [#allocation3], %s4794_s4, %s4794_s4, %s4795_s14  }
  0x24   :  { %s4796_s20 = smov [#allocation6]   ;;  %s4797_s22 = smov [#allocation7]  }
  0x25   :  { %s55_s21 = sshll.u32 %s4796_s20, 4  ;;  %s69_s25 = sshll.u32 %s4797_s22, 4  ;;  %s56_s21 = int_to_ptr.vmem [resolvable:$true] %s55_s21  ;;  %s4885_s25 = int_to_ptr.vmem [resolvable:$true] %s69_s25 }
  0x26   :  { %s4740_s29 = scalar_lea.hbm %s5072_s6, 25600 }
  0x27   :  { %p4741_p2 = scmp.ne.s32.totalorder %s5072_s6, %s4740_s29  ;;  %p4744_p3 = scmp.lt.u32.totalorder %s4740_s29, %s5072_s6 }
  0x29   :  { %p4746_p4 = pnand %p4744_p3, %p4741_p2 }
  0x2b   :  { %4749 = shalt.err (!%p4746_p4)
}
  0x2c   :  { %s4750_s2 = scalar_lea.vmem %s56_s21, 25600  ;;  %p4755_p6 = scmp.lt.s32.totalorder %s56_s21, %s56_s21 }
  0x2d   :  { %p4751_p5 = scmp.ne.s32.totalorder %s56_s21, %s4750_s2  ;;  %p4756_p7 = scmp.lt.s32.totalorder %s4750_s2, %s4750_s2 }
  0x2f   :  { %p4757_p8 = por %p4756_p7, %p4755_p6 }
  0x31   :  { %p4758_p9 = pnand %p4757_p8, %p4751_p5 }
  0x33   :  { %4761 = shalt.err (!%p4758_p9)
}
  0x34   :  { %61 = dma.hbm_to_vmem [thread:$0]  %s5072_s6, 25600, %s56_s21, [#allocation5], %s4791_s23, %s4791_s23, %s4792_s24  }
  0x35   :  { %s4762_s4 = scalar_lea.hbm %s5074_s8, 10240 }
  0x36   :  { %p4763_p10 = scmp.ne.s32.totalorder %s5074_s8, %s4762_s4  ;;  %p4766_p11 = scmp.lt.u32.totalorder %s4762_s4, %s5074_s8 }
  0x38   :  { %p4768_p12 = pnand %p4766_p11, %p4763_p10 }
  0x3a   :  { %4771 = shalt.err (!%p4768_p12)
}
  0x3b   :  { %s4772_s22 = scalar_lea.vmem %s4885_s25, 10240  ;;  %p4777_p0 = scmp.lt.s32.totalorder %s4885_s25, %s4885_s25 }
  0x3c   :  { %p4773_p13 = scmp.ne.s32.totalorder %s4885_s25, %s4772_s22  ;;  %p4778_p1 = scmp.lt.s32.totalorder %s4772_s22, %s4772_s22 }
  0x3e   :  { %p4779_p2 = por %p4778_p1, %p4777_p0 }
  0x40   :  { %p4780_p3 = pnand %p4779_p2, %p4773_p13 }
  0x42   :  { %4783 = shalt.err (!%p4780_p3)
}
  0x43   :  { %s4798_s6 = smov 128   ;;  %s4799_s23 = smov 8  }
  0x44   :  { %75 = dma.hbm_to_vmem [thread:$0]  %s5074_s8, 10240, %s4885_s25, [#allocation8], %s4798_s6, %s4798_s6, %s4799_s23  }
  0x45   :  { %4784 = dma.done.wait [#allocation3], 6144  }
  0x46   :  { %4785 = vsyncadd [#allocation3], 4294961152 }
  0x47   :  { %4786 = dma.done.wait [#allocation5], 40960  }
  0x48   :  { %4787 = vsyncadd [#allocation5], 4294926336 }
  0x49   :  { %4788 = dma.done.wait [#allocation8], 10240  }
  0x4a   :  { %4789 = vsyncadd [#allocation8], 4294957056  ;;  %v4800_v0 = vmov 0.0   ;;  %v94_v1 = vld [vmem:[#allocation2 + $0x8] sm:$0xff]  ;;  %v97_v2 = vld [vmem:[#allocation2 + $0x20] sm:$0xff]  ;;  %vm4802_vm0 = vmmov 0  }
  0x4b   :  { %222 = vmatprep.mubr.f32.mxu0 %v4800_v0  ;;  %v93_v3 = vld [vmem:[#allocation2] sm:$0xff]  ;;  %v4035_v4 = vpack.c.bf16 %v97_v2, %v94_v1  ;;  %v96_v5 = vld [vmem:[#allocation2 + $0x18] sm:$0xff]  ;;  %v103_v7 = vld [vmem:[#allocation2 + $0x50] sm:$0xff] }
  0x4c   :  { %v100_v6 = vld [vmem:[#allocation2 + $0x38] sm:$0xff]  ;;  %v4037_v8 = vpack.c.bf16 %v96_v5, %v93_v3  ;;  %v99_v10 = vld [vmem:[#allocation2 + $0x30] sm:$0xff]  ;;  %v102_v11 = vld [vmem:[#allocation2 + $0x48] sm:$0xff] }
  0x4d   :  { %v4039_v9 = vpack.c.bf16 %v103_v7, %v100_v6  ;;  %v106_v12 = vld [vmem:[#allocation2 + $0x68] sm:$0xff]  ;;  %4036 = vmatprep.subr.bf16.mxu0 %v4035_v4  ;;  %v109_v13 = vld [vmem:[#allocation2 + $0x80] sm:$0xff]  ;;  %v4041_v14 = vpack.c.bf16 %v102_v11, %v99_v10  ;;  %v108_v17 = vld [vmem:[#allocation2 + $0x78] sm:$0xff] }
  0x4e   :  { %4038 = vmatpush1.bf16.msra.mxu0 %v4037_v8  ;;  %v4043_v15 = vpack.c.bf16 %v109_v13, %v106_v12  ;;  %v105_v16 = vld [vmem:[#allocation2 + $0x60] sm:$0xff]  ;;  %v112_v18 = vld [vmem:[#allocation2 + $0x98] sm:$0xff]  ;;  %v115_v19 = vld [vmem:[#allocation2 + $0xb0] sm:$0xff] }
  0x4f   :  { %4040 = vmatprep.subr.bf16.mxu0 %v4039_v9  ;;  %v4045_v20 = vpack.c.bf16 %v108_v17, %v105_v16  ;;  %v4047_v21 = vpack.c.bf16 %v115_v19, %v112_v18  ;;  %v111_v22 = vld [vmem:[#allocation2 + $0x90] sm:$0xff]  ;;  %v114_v23 = vld [vmem:[#allocation2 + $0xa8] sm:$0xff]  ;;  %v121_v25 = vld [vmem:[#allocation2 + $0xe0] sm:$0xff] }
  0x50   :  { %v118_v24 = vld [vmem:[#allocation2 + $0xc8] sm:$0xff]  ;;  %v4923_v26 = vld [vmem:[%s5066_s0] sm:$0xff]  ;;  %v95_v27 = vld [vmem:[#allocation2 + $0x10] sm:$0xff]  ;;  %v4049_v29 = vpack.c.bf16 %v114_v23, %v111_v22 }
  0x51   :  { %v98_v28 = vld [vmem:[#allocation2 + $0x28] sm:$0xff]  ;;  %3957 = vmatprep.mubr.f32.mxu1 %v4923_v26  ;;  %v117_v30 = vld [vmem:[#allocation2 + $0xc0] sm:$0xff]  ;;  %v104_v33 = vld [vmem:[#allocation2 + $0x58] sm:$0xff]  ;;  %v4051_v34 = vpack.c.bf16 %v121_v25, %v118_v24 }
  0x52   :  { %4042 = vmatpush1.bf16.msra.mxu0 %v4041_v14  ;;  %v4067_v31 = vpack.c.bf16 %v98_v28, %v95_v27  ;;  %v101_v32 = vld [vmem:[#allocation2 + $0x40] sm:$0xff]  ;;  %v120_v35 = vld [vmem:[#allocation2 + $0xd8] sm:$0xff]  ;;  %v107_v37 = vld [vmem:[#allocation2 + $0x70] sm:$0xff] }
  0x53   :  { %4044 = vmatprep.subr.bf16.mxu0 %v4043_v15  ;;  %v4071_v36 = vpack.c.bf16 %v104_v33, %v101_v32  ;;  %v110_v38 = vld [vmem:[#allocation2 + $0x88] sm:$0xff]  ;;  %v124_v39 = vld [vmem:[#allocation2 + $0xf8] sm:$0xff]  ;;  %v127_v40 = vld [vmem:[#allocation2 + $0x110] sm:$0xff]  ;;  %v4053_v42 = vpack.c.bf16 %v120_v35, %v117_v30 }
  0x54   :  { %4068 = vmatprep.subr.bf16.mxu1 %v4067_v31  ;;  %v123_v41 = vld [vmem:[#allocation2 + $0xf0] sm:$0xff]  ;;  %v126_v43 = vld [vmem:[#allocation2 + $0x108] sm:$0xff]  ;;  %v4075_v45 = vpack.c.bf16 %v110_v38, %v107_v37  ;;  %v4055_v46 = vpack.c.bf16 %v127_v40, %v124_v39  ;;  %v113_v47 = vld [vmem:[#allocation2 + $0xa0] sm:$0xff] }
  0x55   :  { %4070 = vmatpush3.bf16.msra.mxu1 %v4067_v31  ;;  %v130_v44 = vld [vmem:[#allocation2 + $0x128] sm:$0xff]  ;;  %v116_v48 = vld [vmem:[#allocation2 + $0xb8] sm:$0xff]  ;;  %v133_v49 = vld [vmem:[#allocation2 + $0x140] sm:$0xff]  ;;  %v4057_v51 = vpack.c.bf16 %v126_v43, %v123_v41 }
  0x56   :  { %4046 = vmatpush1.bf16.msra.mxu0 %v4045_v20  ;;  %4072 = vmatprep.subr.bf16.mxu1 %v4071_v36  ;;  %v129_v50 = vld [vmem:[#allocation2 + $0x120] sm:$0xff]  ;;  %v132_v52 = vld [vmem:[#allocation2 + $0x138] sm:$0xff]  ;;  %v4079_v54 = vpack.c.bf16 %v116_v48, %v113_v47  ;;  %v4059_v55 = vpack.c.bf16 %v133_v49, %v130_v44  ;;  %v119_v56 = vld [vmem:[#allocation2 + $0xd0] sm:$0xff] }
  0x57   :  { %4048 = vmatprep.subr.bf16.mxu0 %v4047_v21  ;;  %v136_v53 = vld [vmem:[#allocation2 + $0x158] sm:$0xff]  ;;  %v122_v57 = vld [vmem:[#allocation2 + $0xe8] sm:$0xff]  ;;  %v139_v58 = vld [vmem:[#allocation2 + $0x170] sm:$0xff]  ;;  %v4061_v59 = vpack.c.bf16 %v132_v52, %v129_v50 }
  0x58   :  { %v135_v60 = vld [vmem:[#allocation2 + $0x150] sm:$0xff]  ;;  %v138_v61 = vld [vmem:[#allocation2 + $0x168] sm:$0xff]  ;;  %v4083_v62 = vpack.c.bf16 %v122_v57, %v119_v56  ;;  %v4063_v63 = vpack.c.bf16 %v139_v58, %v136_v53  ;;  %v125_v1 = vld [vmem:[#allocation2 + $0x100] sm:$0xff] }
  0x59   :  { %4074 = vmatpush3.bf16.msra.mxu1 %v4071_v36  ;;  %v128_v2 = vld [vmem:[#allocation2 + $0x118] sm:$0xff]  ;;  %v4065_v3 = vpack.c.bf16 %v138_v61, %v135_v60  ;;  %v131_v5 = vld [vmem:[#allocation2 + $0x130] sm:$0xff]  ;;  %v134_v6 = vld [vmem:[#allocation2 + $0x148] sm:$0xff] }
  0x5a   :  { %4050 = vmatpush1.bf16.msra.mxu0 %v4049_v29  ;;  %4076 = vmatprep.subr.bf16.mxu1 %v4075_v45  ;;  %v4087_v4 = vpack.c.bf16 %v128_v2, %v125_v1  ;;  %v4250_v7 = vld [vmem:[#allocation4 + $0x4] ss:$20 sps:$4 sm:$0xff]   ;;  %v4091_v8 = vpack.c.bf16 %v134_v6, %v131_v5  ;;  %v4248_v11 = vld [vmem:[#allocation4] ss:$20 sps:$4 sm:$0xff]   ;;  %v92_v13 = vld [vmem:[%s5066_s0 + $0x8] sm:$0xff] }
  0x5b   :  { %4052 = vmatprep.subr.bf16.mxu0 %v4051_v34  ;;  %v137_v9 = vld [vmem:[#allocation2 + $0x160] sm:$0xff]  ;;  %v140_v10 = vld [vmem:[#allocation2 + $0x178] sm:$0xff]  ;;  %v4262_v16 = vld [vmem:[#allocation4 + $0x54] ss:$20 sps:$4 sm:$0xff]  }
  0x5c   :  { %v4256_v12 = vld [vmem:[#allocation4 + $0x2c] ss:$20 sps:$4 sm:$0xff]   ;;  %v4095_v14 = vpack.c.bf16 %v140_v10, %v137_v9  ;;  %v4254_v15 = vld [vmem:[#allocation4 + $0x28] ss:$20 sps:$4 sm:$0xff]   ;;  %v4260_v18 = vld [vmem:[#allocation4 + $0x50] ss:$20 sps:$4 sm:$0xff]  }
  0x5d   :  { %4078 = vmatpush3.bf16.msra.mxu1 %v4075_v45  ;;  %v4253_v17 = vld [vmem:[#allocation4 + $0xc] ss:$20 sps:$4 sm:$0xff]   ;;  %v4268_v19 = vld [vmem:[#allocation4 + $0x7c] ss:$20 sps:$4 sm:$0xff]   ;;  %v4259_v21 = vld [vmem:[#allocation4 + $0x34] ss:$20 sps:$4 sm:$0xff]  }
  0x5e   :  { %4054 = vmatpush1.bf16.msra.mxu0 %v4053_v42  ;;  %4080 = vmatprep.subr.bf16.mxu1 %v4079_v54  ;;  %v4251_v20 = vld [vmem:[#allocation4 + $0x8] ss:$20 sps:$4 sm:$0xff]   ;;  %v4266_v22 = vld [vmem:[#allocation4 + $0x78] ss:$20 sps:$4 sm:$0xff]   ;;  %v4257_v24 = vld [vmem:[#allocation4 + $0x30] ss:$20 sps:$4 sm:$0xff]  }
  0x5f   :  { %4056 = vmatprep.subr.bf16.mxu0 %v4055_v46  ;;  %v4274_v23 = vld [vmem:[#allocation4 + $0xa4] ss:$20 sps:$4 sm:$0xff]   ;;  %v4265_v25 = vld [vmem:[#allocation4 + $0x5c] ss:$20 sps:$4 sm:$0xff]   ;;  %v4272_v27 = vld [vmem:[#allocation4 + $0xa0] ss:$20 sps:$4 sm:$0xff]  }
  0x60   :  { %v4280_v28 = vld [vmem:[#allocation4 + $0xcc] ss:$20 sps:$4 sm:$0xff]   ;;  %v4271_v29 = vld [vmem:[#allocation4 + $0x84] ss:$20 sps:$4 sm:$0xff]   ;;  %v4278_v30 = vld [vmem:[#allocation4 + $0xc8] ss:$20 sps:$4 sm:$0xff]  }
  0x61   :  { %4082 = vmatpush3.bf16.msra.mxu1 %v4079_v54  ;;  %v4286_v31 = vld [vmem:[#allocation4 + $0xf4] ss:$20 sps:$4 sm:$0xff]   ;;  %v4277_v33 = vld [vmem:[#allocation4 + $0xac] ss:$20 sps:$4 sm:$0xff]   ;;  %v4284_v34 = vld [vmem:[#allocation4 + $0xf0] ss:$20 sps:$4 sm:$0xff]  }
  0x62   :  { %4058 = vmatpush1.bf16.msra.mxu0 %v4057_v51  ;;  %4084 = vmatprep.subr.bf16.mxu1 %v4083_v62  ;;  %v4269_v32 = vld [vmem:[#allocation4 + $0x80] ss:$20 sps:$4 sm:$0xff]   ;;  %v4292_v35 = vld [vmem:[#allocation4 + $0x11c] ss:$20 sps:$4 sm:$0xff]   ;;  %v4290_v38 = vld [vmem:[#allocation4 + $0x118] ss:$20 sps:$4 sm:$0xff]  }
  0x63   :  { %4060 = vmatprep.subr.bf16.mxu0 %v4059_v55  ;;  %v4275_v36 = vld [vmem:[#allocation4 + $0xa8] ss:$20 sps:$4 sm:$0xff]   ;;  %v4298_v39 = vld [vmem:[#allocation4 + $0x144] ss:$20 sps:$4 sm:$0xff]   ;;  %v4296_v42 = vld [vmem:[#allocation4 + $0x140] ss:$20 sps:$4 sm:$0xff]  }
  0x64   :  { %v4283_v37 = vld [vmem:[#allocation4 + $0xd4] ss:$20 sps:$4 sm:$0xff]   ;;  %v4281_v40 = vld [vmem:[#allocation4 + $0xd0] ss:$20 sps:$4 sm:$0xff]   ;;  %v4304_v43 = vld [vmem:[#allocation4 + $0x16c] ss:$20 sps:$4 sm:$0xff]  }
  0x65   :  { %4086 = vmatpush3.bf16.msra.mxu1 %v4083_v62  ;;  %v4289_v41 = vld [vmem:[#allocation4 + $0xfc] ss:$20 sps:$4 sm:$0xff]   ;;  %v4287_v44 = vld [vmem:[#allocation4 + $0xf8] ss:$20 sps:$4 sm:$0xff]   ;;  %v4310_v47 = vld [vmem:[#allocation4 + $0x194] ss:$20 sps:$4 sm:$0xff]  }
  0x66   :  { %4062 = vmatpush1.bf16.msra.mxu0 %v4061_v59  ;;  %4088 = vmatprep.subr.bf16.mxu1 %v4087_v4  ;;  %v4295_v45 = vld [vmem:[#allocation4 + $0x124] ss:$20 sps:$4 sm:$0xff]   ;;  %v4302_v46 = vld [vmem:[#allocation4 + $0x168] ss:$20 sps:$4 sm:$0xff]   ;;  %v4293_v48 = vld [vmem:[#allocation4 + $0x120] ss:$20 sps:$4 sm:$0xff]  }
  0x67   :  { %4064 = vmatprep.subr.bf16.mxu0 %v4063_v63  ;;  %v4301_v49 = vld [vmem:[#allocation4 + $0x14c] ss:$20 sps:$4 sm:$0xff]   ;;  %v4308_v50 = vld [vmem:[#allocation4 + $0x190] ss:$20 sps:$4 sm:$0xff]   ;;  %v4299_v52 = vld [vmem:[#allocation4 + $0x148] ss:$20 sps:$4 sm:$0xff]  }
  0x68   :  { %v4316_v51 = vld [vmem:[#allocation4 + $0x1bc] ss:$20 sps:$4 sm:$0xff]   ;;  %v4307_v53 = vld [vmem:[#allocation4 + $0x174] ss:$20 sps:$4 sm:$0xff]   ;;  %v4314_v54 = vld [vmem:[#allocation4 + $0x1b8] ss:$20 sps:$4 sm:$0xff]  }
  0x69   :  { %4090 = vmatpush3.bf16.msra.mxu1 %v4087_v4  ;;  %v4322_v55 = vld [vmem:[#allocation4 + $0x1e4] ss:$20 sps:$4 sm:$0xff]   ;;  %v4313_v57 = vld [vmem:[#allocation4 + $0x19c] ss:$20 sps:$4 sm:$0xff]   ;;  %v4320_v58 = vld [vmem:[#allocation4 + $0x1e0] ss:$20 sps:$4 sm:$0xff]  }
  0x6a   :  { %4066 = vmatpush1.bf16.msra.mxu0 %v4065_v3  ;;  %4092 = vmatprep.subr.bf16.mxu1 %v4091_v8  ;;  %v4305_v56 = vld [vmem:[#allocation4 + $0x170] ss:$20 sps:$4 sm:$0xff]   ;;  %v4311_v59 = vld [vmem:[#allocation4 + $0x198] ss:$20 sps:$4 sm:$0xff]   ;;  %v4317_v61 = vld [vmem:[#allocation4 + $0x1c0] ss:$20 sps:$4 sm:$0xff]  }
  0x6b   :  { %1130 = vmatprep.subr.bf16.mxu0 %v4250_v7  ;;  %v4319_v60 = vld [vmem:[#allocation4 + $0x1c4] ss:$20 sps:$4 sm:$0xff]   ;;  %v4325_v62 = vld [vmem:[#allocation4 + $0x1ec] ss:$20 sps:$4 sm:$0xff]   ;;  %v4323_v63 = vld [vmem:[#allocation4 + $0x1e8] ss:$20 sps:$4 sm:$0xff]  }
  0x6c   :  { %v4328_v1 = vld [vmem:[#allocation4 + $0x20c] ss:$20 sps:$4 sm:$0xff]   ;;  %v4331_v2 = vld [vmem:[#allocation4 + $0x214] ss:$20 sps:$4 sm:$0xff]   ;;  %v4329_v4 = vld [vmem:[#allocation4 + $0x210] ss:$20 sps:$4 sm:$0xff]  }
  0x6d   :  { %223 = vmatmul.mubr.f32.vlgmr.msra.gmra.mrb[0].mxu0 %v4923_v26  ;;  %4094 = vmatpush3.bf16.msra.mxu1 %v4091_v8  ;;  %v4263_v26 = vld [vmem:[#allocation4 + $0x58] ss:$20 sps:$4 sm:$0xff]   ;;  %v4326_v3 = vld [vmem:[#allocation4 + $0x208] ss:$20 sps:$4 sm:$0xff]   ;;  %v4332_v7 = vld [vmem:[#allocation4 + $0x230] ss:$20 sps:$4 sm:$0xff]  }
  0x6e   :  { %228 = vmatprep.mubr.f32.mxu0 %v4800_v0  ;;  %1131 = vmatpush1.bf16.msra.mxu0 %v4248_v11  ;;  %v4334_v5 = vld [vmem:[#allocation4 + $0x234] ss:$20 sps:$4 sm:$0xff]   ;;  %v4337_v6 = vld [vmem:[#allocation4 + $0x23c] ss:$20 sps:$4 sm:$0xff]   ;;  %v4335_v8 = vld [vmem:[#allocation4 + $0x238] ss:$20 sps:$4 sm:$0xff]  }
  0x6f   :  { %1132 = vmatprep.subr.bf16.mxu0 %v4256_v12  ;;  %4096 = vmatprep.subr.bf16.mxu1 %v4095_v14  ;;  %v4340_v9 = vld [vmem:[#allocation4 + $0x25c] ss:$20 sps:$4 sm:$0xff]   ;;  %v4343_v10 = vld [vmem:[#allocation4 + $0x264] ss:$20 sps:$4 sm:$0xff]   ;;  %v4341_v12 = vld [vmem:[#allocation4 + $0x260] ss:$20 sps:$4 sm:$0xff]  }
  0x70   :  { %v4338_v11 = vld [vmem:[#allocation4 + $0x258] ss:$20 sps:$4 sm:$0xff]  }
  0x71   :  { %229 = vmatmul.mubr.f32.gmra.mrb[2].mxu0 %v92_v13  ;;  %4098 = vmatpush3.bf16.msra.mxu1 %v4095_v14  ;;  %v4349_v14 = vld [vmem:[#allocation4 + $0x28c] ss:$20 sps:$4 sm:$0xff]  }
  0x72   :  { %1133 = vmatpush1.bf16.msra.mxu0 %v4254_v15  ;;  %1216 = vmatprep.subr.bf16.mxu1 %v4253_v17  ;;  %v143_v15 = vlaneseq }
  0x73   :  { %1134 = vmatprep.subr.bf16.mxu0 %v4262_v16 }
  0x74   :  { %3958 = vmatmul.mubr.f32.vlgmr.msra.gmra.mrb[0].mxu1 %v92_v13  ;;  %v4346_v13 = vld [vmem:[#allocation4 + $0x284] ss:$20 sps:$4 sm:$0xff]   ;;  %v4931_v16 = vshrl.u32 %v143_v15, 7  ;;  %v4371_v15 = vld [vmem:[#allocation4 + $0x328] ss:$20 sps:$4 sm:$0xff]  }
  0x75   :  { %1217 = vmatpush1.bf16.msra.mxu1 %v4251_v20 }
  0x76   :  { %1135 = vmatpush1.bf16.msra.mxu0 %v4260_v18  ;;  %1218 = vmatprep.subr.bf16.mxu1 %v4259_v21  ;;  %v4934_v17 = vsub.s32 0, %v4931_v16  ;;  %v141_v18 = vld [vmem:[%s5069_s3] sm:$0x7] }
  0x77   :  { %1136 = vmatprep.subr.bf16.mxu0 %v4268_v19  ;;  %v4940_v19 = vsub.s32 1, %v4931_v16 }
  0x78   :  { %v146_v20 = vrot.slane %v141_v18, %v4934_v17 }
  0x79   :  { %1219 = vmatpush1.bf16.msra.mxu1 %v4257_v24  ;;  %v150_v21 = vrot.slane %v141_v18, %v4940_v19 }
  0x7a   :  { %1137 = vmatpush1.bf16.msra.mxu0 %v4266_v22  ;;  %1220 = vmatprep.subr.bf16.mxu1 %v4265_v25  ;;  %v316_v25 = vld [vmem:[%s5067_s1] sm:$0xff] }
  0x7b   :  { %1138 = vmatprep.subr.bf16.mxu0 %v4274_v23 }
  0x7d   :  { %1221 = vmatpush1.bf16.msra.mxu1 %v4263_v26 }
  0x7e   :  { %1139 = vmatpush1.bf16.msra.mxu0 %v4272_v27  ;;  %1222 = vmatprep.subr.bf16.mxu1 %v4271_v29  ;;  %v318_v27 = vld [vmem:[%s5067_s1 + $0xc] sm:$0xff]  ;;  %v4951_v29 = vsub.s32 2, %v4931_v16 }
  0x7f   :  { %1140 = vmatprep.subr.bf16.mxu0 %v4280_v28 }
  0x81   :  { %1223 = vmatpush1.bf16.msra.mxu1 %v4269_v32 }
  0x82   :  { %1141 = vmatpush1.bf16.msra.mxu0 %v4278_v30  ;;  %1224 = vmatprep.subr.bf16.mxu1 %v4277_v33  ;;  %v323_v33 = vunpack.c.l.bf16 %v318_v27 }
  0x83   :  { %1142 = vmatprep.subr.bf16.mxu0 %v4286_v31  ;;  %v320_v31 = vunpack.c.l.bf16 %v316_v25 }
  0x85   :  { %1225 = vmatpush1.bf16.msra.mxu1 %v4275_v36  ;;  %v321_v36 = vunpack.c.h.bf16 %v316_v25  ;;  %v4380_v25 = vld [vmem:[#allocation4 + $0x370] ss:$20 sps:$4 sm:$0xff]  }
  0x86   :  { %1143 = vmatpush1.bf16.msra.mxu0 %v4284_v34  ;;  %1226 = vmatprep.subr.bf16.mxu1 %v4283_v37 }
  0x87   :  { %1144 = vmatprep.subr.bf16.mxu0 %v4292_v35 }
  0x89   :  { %1227 = vmatpush1.bf16.msra.mxu1 %v4281_v40 }
  0x8a   :  { %1145 = vmatpush1.bf16.msra.mxu0 %v4290_v38  ;;  %1228 = vmatprep.subr.bf16.mxu1 %v4289_v41  ;;  %v324_v38 = vunpack.c.h.bf16 %v318_v27  ;;  %v154_v41 = vrot.slane %v141_v18, %v4951_v29  ;;  %v4376_v18 = vld [vmem:[#allocation4 + $0x34c] ss:$20 sps:$4 sm:$0xff]   ;;  %v4388_v27 = vld [vmem:[#allocation4 + $0x39c] ss:$20 sps:$4 sm:$0xff]  }
  0x8b   :  { %1146 = vmatprep.subr.bf16.mxu0 %v4298_v39 }
  0x8d   :  { %1229 = vmatpush1.bf16.msra.mxu1 %v4287_v44  ;;  %v319_v44 = vld [vmem:[%s5067_s1 + $0x8] ss:$12 sps:$4 sm:$0xff]  }
  0x8e   :  { %1147 = vmatpush1.bf16.msra.mxu0 %v4296_v42  ;;  %1230 = vmatprep.subr.bf16.mxu1 %v4295_v45 }
  0x8f   :  { %1148 = vmatprep.subr.bf16.mxu0 %v4304_v43 }
  0x91   :  { %1231 = vmatpush1.bf16.msra.mxu1 %v4293_v48 }
  0x92   :  { %1149 = vmatpush1.bf16.msra.mxu0 %v4302_v46  ;;  %1232 = vmatprep.subr.bf16.mxu1 %v4301_v49 }
  0x93   :  { %1150 = vmatprep.subr.bf16.mxu0 %v4310_v47 }
  0x95   :  { %1233 = vmatpush1.bf16.msra.mxu1 %v4299_v52 }
  0x96   :  { %1151 = vmatpush1.bf16.msra.mxu0 %v4308_v50  ;;  %1234 = vmatprep.subr.bf16.mxu1 %v4307_v53  ;;  %v4344_v50 = vld [vmem:[#allocation4 + $0x280] ss:$20 sps:$4 sm:$0xff]   ;;  %v325_v53 = vunpack.c.h.bf16 %v319_v44 }
  0x97   :  { %1152 = vmatprep.subr.bf16.mxu0 %v4316_v51  ;;  %v4347_v51 = vld [vmem:[#allocation4 + $0x288] ss:$20 sps:$4 sm:$0xff]  }
  0x99   :  { %1235 = vmatpush1.bf16.msra.mxu1 %v4305_v56  ;;  %v4355_v56 = vld [vmem:[#allocation4 + $0x2b4] ss:$20 sps:$4 sm:$0xff]  }
  0x9a   :  { %1153 = vmatpush1.bf16.msra.mxu0 %v4314_v54  ;;  %1236 = vmatprep.subr.bf16.mxu1 %v4313_v57 }
  0x9b   :  { %1154 = vmatprep.subr.bf16.mxu0 %v4322_v55  ;;  %v4352_v55 = vld [vmem:[#allocation4 + $0x2ac] ss:$20 sps:$4 sm:$0xff]  }
  0x9d   :  { %1237 = vmatpush1.bf16.msra.mxu1 %v4311_v59 }
  0x9e   :  { %1155 = vmatpush1.bf16.msra.mxu0 %v4320_v58  ;;  %1238 = vmatprep.subr.bf16.mxu1 %v4319_v60  ;;  %v322_v58 = vunpack.c.l.bf16 %v319_v44  ;;  %v4404_v44 = vld [vmem:[#allocation4 + $0x1f0] ss:$20 sps:$4 sm:$0xff]  }
  0x9f   :  { %1156 = vmatprep.subr.bf16.mxu0 %v4328_v1  ;;  %v4358_v1 = vld [vmem:[#allocation4 + $0x2d4] ss:$20 sps:$4 sm:$0xff]  }
  0xa1   :  { %1239 = vmatpush1.bf16.msra.mxu1 %v4317_v61  ;;  %v4350_v61 = vld [vmem:[#allocation4 + $0x2a8] ss:$20 sps:$4 sm:$0xff]  }
  0xa2   :  { %1240 = vmatprep.subr.bf16.mxu1 %v4325_v62  ;;  %1157 = vmatpush1.bf16.msra.mxu0 %v4326_v3  ;;  %v4353_v62 = vld [vmem:[#allocation4 + $0x2b0] ss:$20 sps:$4 sm:$0xff]  }
  0xa3   :  { %1158 = vmatprep.subr.bf16.mxu0 %v4334_v5 }
  0xa5   :  { %1241 = vmatpush1.bf16.msra.mxu1 %v4323_v63 }
  0xa6   :  { %1242 = vmatprep.subr.bf16.mxu1 %v4331_v2  ;;  %1159 = vmatpush1.bf16.msra.mxu0 %v4332_v7  ;;  %v4361_v2 = vld [vmem:[#allocation4 + $0x2dc] ss:$20 sps:$4 sm:$0xff]   ;;  %v4359_v7 = vld [vmem:[#allocation4 + $0x2d8] ss:$20 sps:$4 sm:$0xff]  }
  0xa7   :  { %1160 = vmatprep.subr.bf16.mxu0 %v4340_v9  ;;  %v4367_v9 = vld [vmem:[#allocation4 + $0x304] ss:$20 sps:$4 sm:$0xff]  }
  0xa9   :  { %1243 = vmatpush1.bf16.msra.mxu1 %v4329_v4  ;;  %v4801_v4 = vmov 0  }
  0xaa   :  { %1244 = vmatprep.subr.bf16.mxu1 %v4337_v6  ;;  %1161 = vmatpush1.bf16.msra.mxu0 %v4338_v11  ;;  %v4356_v6 = vld [vmem:[#allocation4 + $0x2d0] ss:$20 sps:$4 sm:$0xff]   ;;  %v4365_v11 = vld [vmem:[#allocation4 + $0x300] ss:$20 sps:$4 sm:$0xff]  }
  0xab   :  { %1173 = vmatprep.subr.bf16.mxu0 %v4346_v13  ;;  %v4373_v13 = vld [vmem:[#allocation4 + $0x32c] ss:$20 sps:$4 sm:$0xff]  }
  0xad   :  { %1245 = vmatpush1.bf16.msra.mxu1 %v4335_v8  ;;  %v4364_v8 = vld [vmem:[#allocation4 + $0x2fc] ss:$20 sps:$4 sm:$0xff]  }
  0xae   :  { %1246 = vmatprep.subr.bf16.mxu1 %v4343_v10  ;;  %v4362_v10 = vld [vmem:[#allocation4 + $0x2f8] ss:$20 sps:$4 sm:$0xff]  }
  0xb1   :  { %1247 = vmatpush1.bf16.msra.mxu1 %v4341_v12  ;;  %v4370_v12 = vld [vmem:[#allocation4 + $0x324] ss:$20 sps:$4 sm:$0xff]  }
  0xb2   :  { %1259 = vmatprep.subr.bf16.mxu1 %v4349_v14  ;;  %v4368_v14 = vld [vmem:[#allocation4 + $0x320] ss:$20 sps:$4 sm:$0xff]  }
 0x140   :  { %v224_v22 = vpop.f32.mrb[0].mxu0 }
 0x141   :  { %v225_v23 = vadd.f32 %v224_v22, %v146_v20  ;;  %v226_v24 = vpop.f32.mrb[1].mxu0  ;;  %v4377_v22 = vld [vmem:[#allocation4 + $0x350] ss:$20 sps:$4 sm:$0xff]  }
 0x142   :  { %v227_v26 = vadd.f32 %v226_v24, %v150_v21  ;;  %v4385_v24 = vld [vmem:[#allocation4 + $0x37c] ss:$20 sps:$4 sm:$0xff]  }
 0x143   :  { %v310_v30 = vmax.f32 %v225_v23, 0.0  ;;  %v4382_v23 = vld [vmem:[#allocation4 + $0x374] ss:$20 sps:$4 sm:$0xff]  }
 0x144   :  { %v230_v28 = vpop.f32.mrb[2].mxu0  ;;  %v311_v35 = vmax.f32 %v227_v26, 0.0  ;;  %v4383_v26 = vld [vmem:[#allocation4 + $0x378] ss:$20 sps:$4 sm:$0xff]  }
 0x145   :  { %v231_v32 = vadd.f32 %v230_v28, %v146_v20  ;;  %v232_v34 = vpop.f32.mrb[3].mxu0  ;;  %v326_v42 = vadd.f32 %v320_v31, %v310_v30  ;;  %v4379_v20 = vld [vmem:[#allocation4 + $0x354] ss:$20 sps:$4 sm:$0xff]   ;;  %v4391_v28 = vld [vmem:[#allocation4 + $0x3a4] ss:$20 sps:$4 sm:$0xff]  }
 0x146   :  { %v233_v37 = vadd.f32 %v232_v34, %v150_v21  ;;  %v327_v45 = vadd.f32 %v321_v36, %v311_v35  ;;  %v4374_v21 = vld [vmem:[#allocation4 + $0x348] ss:$20 sps:$4 sm:$0xff]   ;;  %v4386_v30 = vld [vmem:[#allocation4 + $0x398] ss:$20 sps:$4 sm:$0xff]   ;;  %v4389_v31 = vld [vmem:[#allocation4 + $0x3a0] ss:$20 sps:$4 sm:$0xff]  }
 0x147   :  { %v313_v39 = vmax.f32 %v231_v32, 0.0  ;;  %v3959_v48 = vpop.f32.mrb[0].mxu1  ;;  %v4392_v32 = vld [vmem:[#allocation4 + $0x150] ss:$20 sps:$4 sm:$0xff]   ;;  %v4395_v35 = vld [vmem:[#allocation4 + $0x178] ss:$20 sps:$4 sm:$0xff]  }
 0x148   :  { %v314_v40 = vmax.f32 %v233_v37, 0.0  ;;  %v307_v52 = vadd.f32 %v3959_v48, %v154_v41  ;;  %v301_v54 = vpop.f32.mrb[1].mxu1  ;;  %v4394_v34 = vld [vmem:[#allocation4 + $0x290] ss:$20 sps:$4 sm:$0xff]   ;;  %v4396_v36 = vld [vmem:[#allocation4 + $0x38] ss:$20 sps:$4 sm:$0xff]  }
 0x149   :  { %v329_v43 = vadd.f32 %v323_v33, %v313_v39  ;;  %v302_v57 = vadd.f32 %v301_v54, %v154_v41  ;;  %v4393_v33 = vld [vmem:[#allocation4 + $0x10] ss:$20 sps:$4 sm:$0xff]   ;;  %v4397_v37 = vld [vmem:[#allocation4 + $0x2b8] ss:$20 sps:$4 sm:$0xff]   ;;  %v4399_v39 = vld [vmem:[#allocation4 + $0x60] ss:$20 sps:$4 sm:$0xff]  }
 0x14a   :  { %v330_v46 = vadd.f32 %v324_v38, %v314_v40  ;;  %v315_v59 = vmax.f32 %v307_v52, 0.0  ;;  %v4398_v38 = vld [vmem:[#allocation4 + $0x1a0] ss:$20 sps:$4 sm:$0xff]   ;;  %v4401_v41 = vld [vmem:[#allocation4 + $0x1c8] ss:$20 sps:$4 sm:$0xff]  }
 0x14b   :  { %v4957_v47 = vpack.c.bf16 %v329_v43, %v326_v42  ;;  %v312_v60 = vmax.f32 %v302_v57, 0.0  ;;  %v4400_v40 = vld [vmem:[#allocation4 + $0x2e0] ss:$20 sps:$4 sm:$0xff]   ;;  %v4402_v42 = vld [vmem:[#allocation4 + $0x88] ss:$20 sps:$4 sm:$0xff]  }
 0x14c   :  { %v4959_v49 = vpack.c.bf16 %v330_v46, %v327_v45  ;;  %v331_v63 = vadd.f32 %v325_v53, %v315_v59  ;;  %v4403_v43 = vld [vmem:[#allocation4 + $0x308] ss:$20 sps:$4 sm:$0xff]   ;;  %v4405_v45 = vld [vmem:[#allocation4 + $0xb0] ss:$20 sps:$4 sm:$0xff]   ;;  %v4407_v48 = vld [vmem:[#allocation4 + $0x218] ss:$20 sps:$4 sm:$0xff]  }
 0x14d   :  { %v328_v3 = vadd.f32 %v322_v58, %v312_v60  ;;  %v4406_v46 = vld [vmem:[#allocation4 + $0x330] ss:$20 sps:$4 sm:$0xff]   ;;  %v4411_v52 = vld [vmem:[#allocation4 + $0x100] ss:$20 sps:$4 sm:$0xff]   ;;  %v4413_v54 = vld [vmem:[#allocation4 + $0x268] ss:$20 sps:$4 sm:$0xff]  }
 0x14e   :  { %1162 = vmatprep.mubr.bf16.mxu0 %v4959_v49  ;;  %1248 = vmatprep.mubr.bf16.mxu1 %v4959_v49  ;;  %v4412_v53 = vld [vmem:[#allocation4 + $0x380] ss:$20 sps:$4 sm:$0xff]   ;;  %v4418_v57 = vld [vmem:[#allocation6 + $0x4] ss:$20 sps:$4 sm:$0xff]   ;;  %v4419_v60 = vld [vmem:[#allocation6 + $0x8] ss:$20 sps:$4 sm:$0xff]  }
 0x14f   :  { %1163 = vmatmul.mubr.bf16.vlgmr.msra.gmra.mrb[4].mxu0 %v4957_v47  ;;  %1249 = vmatmul.mubr.bf16.vlgmr.msra.gmra.mrb[4].mxu1 %v4957_v47  ;;  %v4967_v5 = vpack.c.bf16 %v331_v63, %v328_v3  ;;  %v4421_v58 = vld [vmem:[#allocation6 + $0xc] ss:$20 sps:$4 sm:$0xff]   ;;  %v4422_v63 = vld [vmem:[#allocation6 + $0x28] ss:$20 sps:$4 sm:$0xff]  }
 0x150   :  { %1174 = vmatpush1.bf16.msra.mxu0 %v4344_v50  ;;  %1260 = vmatpush1.bf16.msra.mxu1 %v4347_v51  ;;  %v4409_v50 = vld [vmem:[#allocation4 + $0x358] ss:$20 sps:$4 sm:$0xff]   ;;  %v4410_v51 = vld [vmem:[#allocation4 + $0x240] ss:$20 sps:$4 sm:$0xff]   ;;  %v4433_v3 = vld [vmem:[#allocation6 + $0x5c] ss:$20 sps:$4 sm:$0xff]  }
 0x151   :  { %1175 = vmatprep.subr.bf16.mxu0 %v4352_v55  ;;  %1261 = vmatprep.subr.bf16.mxu1 %v4355_v56  ;;  %v4414_v55 = vld [vmem:[#allocation4 + $0x128] ss:$20 sps:$4 sm:$0xff]   ;;  %v4416_v59 = vld [vmem:[#allocation6] ss:$20 sps:$4 sm:$0xff]  }
 0x152   :  { %1205 = vmatprep.mubr.bf16.mxu0 %v4801_v4  ;;  %1291 = vmatprep.mubr.bf16.mxu1 %v4801_v4  ;;  %v4415_v56 = vld [vmem:[#allocation4 + $0x3a8] ss:$20 sps:$4 sm:$0xff]  }
 0x154   :  { %1176 = vmatpush1.bf16.msra.mxu0 %v4350_v61  ;;  %1262 = vmatpush1.bf16.msra.mxu1 %v4353_v62  ;;  %v4424_v61 = vld [vmem:[#allocation6 + $0x2c] ss:$20 sps:$4 sm:$0xff]   ;;  %v4427_v62 = vld [vmem:[#allocation6 + $0x34] ss:$20 sps:$4 sm:$0xff]  }
 0x155   :  { %1177 = vmatprep.subr.bf16.mxu0 %v4358_v1  ;;  %1263 = vmatprep.subr.bf16.mxu1 %v4361_v2  ;;  %v4425_v1 = vld [vmem:[#allocation6 + $0x30] ss:$20 sps:$4 sm:$0xff]   ;;  %v4430_v2 = vld [vmem:[#allocation6 + $0x54] ss:$20 sps:$4 sm:$0xff]  }
 0x158   :  { %1178 = vmatpush1.bf16.msra.mxu0 %v4356_v6  ;;  %1264 = vmatpush1.bf16.msra.mxu1 %v4359_v7  ;;  %v4428_v6 = vld [vmem:[#allocation6 + $0x50] ss:$20 sps:$4 sm:$0xff]   ;;  %v4431_v7 = vld [vmem:[#allocation6 + $0x58] ss:$20 sps:$4 sm:$0xff]  }
 0x159   :  { %1179 = vmatprep.subr.bf16.mxu0 %v4364_v8  ;;  %1265 = vmatprep.subr.bf16.mxu1 %v4367_v9  ;;  %v4436_v8 = vld [vmem:[#allocation6 + $0x7c] ss:$20 sps:$4 sm:$0xff]   ;;  %v4439_v9 = vld [vmem:[#allocation6 + $0x84] ss:$20 sps:$4 sm:$0xff]  }
 0x15c   :  { %1180 = vmatpush1.bf16.msra.mxu0 %v4362_v10  ;;  %1266 = vmatpush1.bf16.msra.mxu1 %v4365_v11  ;;  %v4442_v10 = vld [vmem:[#allocation6 + $0xa4] ss:$20 sps:$4 sm:$0xff]   ;;  %v4445_v11 = vld [vmem:[#allocation6 + $0xac] ss:$20 sps:$4 sm:$0xff]  }
 0x15d   :  { %1181 = vmatprep.subr.bf16.mxu0 %v4370_v12  ;;  %1267 = vmatprep.subr.bf16.mxu1 %v4373_v13  ;;  %v4440_v12 = vld [vmem:[#allocation6 + $0xa0] ss:$20 sps:$4 sm:$0xff]   ;;  %v4443_v13 = vld [vmem:[#allocation6 + $0xa8] ss:$20 sps:$4 sm:$0xff]  }
 0x160   :  { %1182 = vmatpush1.bf16.msra.mxu0 %v4368_v14  ;;  %1268 = vmatpush1.bf16.msra.mxu1 %v4371_v15  ;;  %v4448_v14 = vld [vmem:[#allocation6 + $0xcc] ss:$20 sps:$4 sm:$0xff]   ;;  %v4451_v15 = vld [vmem:[#allocation6 + $0xd4] ss:$20 sps:$4 sm:$0xff]  }
 0x161   :  { %1183 = vmatprep.subr.bf16.mxu0 %v4376_v18  ;;  %1269 = vmatprep.subr.bf16.mxu1 %v4379_v20  ;;  %v4446_v18 = vld [vmem:[#allocation6 + $0xc8] ss:$20 sps:$4 sm:$0xff]   ;;  %v4449_v20 = vld [vmem:[#allocation6 + $0xd0] ss:$20 sps:$4 sm:$0xff]  }
 0x164   :  { %1184 = vmatpush1.bf16.msra.mxu0 %v4374_v21  ;;  %1270 = vmatpush1.bf16.msra.mxu1 %v4377_v22  ;;  %v4454_v21 = vld [vmem:[#allocation6 + $0xf4] ss:$20 sps:$4 sm:$0xff]   ;;  %v4457_v22 = vld [vmem:[#allocation6 + $0xfc] ss:$20 sps:$4 sm:$0xff]  }
 0x165   :  { %1185 = vmatprep.subr.bf16.mxu0 %v4382_v23  ;;  %1271 = vmatprep.subr.bf16.mxu1 %v4385_v24  ;;  %v4452_v23 = vld [vmem:[#allocation6 + $0xf0] ss:$20 sps:$4 sm:$0xff]   ;;  %v4455_v24 = vld [vmem:[#allocation6 + $0xf8] ss:$20 sps:$4 sm:$0xff]  }
 0x168   :  { %1186 = vmatpush1.bf16.msra.mxu0 %v4380_v25  ;;  %1272 = vmatpush1.bf16.msra.mxu1 %v4383_v26  ;;  %v4460_v25 = vld [vmem:[#allocation6 + $0x11c] ss:$20 sps:$4 sm:$0xff]   ;;  %v4463_v26 = vld [vmem:[#allocation6 + $0x124] ss:$20 sps:$4 sm:$0xff]  }
 0x169   :  { %1187 = vmatprep.subr.bf16.mxu0 %v4388_v27  ;;  %1273 = vmatprep.subr.bf16.mxu1 %v4391_v28  ;;  %v4458_v27 = vld [vmem:[#allocation6 + $0x118] ss:$20 sps:$4 sm:$0xff]   ;;  %v4461_v28 = vld [vmem:[#allocation6 + $0x120] ss:$20 sps:$4 sm:$0xff]  }
 0x16c   :  { %1188 = vmatpush1.bf16.msra.mxu0 %v4386_v30  ;;  %1274 = vmatpush1.bf16.msra.mxu1 %v4389_v31  ;;  %v4466_v30 = vld [vmem:[#allocation6 + $0x144] ss:$20 sps:$4 sm:$0xff]   ;;  %v4469_v31 = vld [vmem:[#allocation6 + $0x14c] ss:$20 sps:$4 sm:$0xff]  }
 0x16d   :  { %3747 = vmatprep.subr.bf16.mxu0 %v4392_v32  ;;  %3960 = vmatprep.subr.bf16.mxu1 %v4800_v0  ;;  %v4464_v32 = vld [vmem:[#allocation6 + $0x140] ss:$20 sps:$4 sm:$0xff]  }
 0x16f   :  { %1206 = vmatmul.mubr.bf16.vlgmr.msra.gmra.mrb[4].mxu0 %v4967_v5  ;;  %1292 = vmatmul.mubr.bf16.vlgmr.msra.gmra.mrb[4].mxu1 %v4967_v5 }
 0x170   :  { %3748 = vmatpush3.bf16.msra.mxu0 %v4393_v33  ;;  %1334 = vmatprep.mubr.bf16.mxu0 %v4959_v49  ;;  %v4408_v49 = vld [vmem:[#allocation4 + $0xd8] ss:$20 sps:$4 sm:$0xff]   ;;  %v4467_v33 = vld [vmem:[#allocation6 + $0x148] ss:$20 sps:$4 sm:$0xff]  }
 0x171   :  { %3961 = vmatpush3.bf16.msra.mxu1 %v4394_v34  ;;  %3749 = vmatprep.subr.bf16.mxu0 %v4395_v35  ;;  %v4472_v34 = vld [vmem:[#allocation6 + $0x16c] ss:$20 sps:$4 sm:$0xff]   ;;  %v4475_v35 = vld [vmem:[#allocation6 + $0x174] ss:$20 sps:$4 sm:$0xff]  }
 0x172   :  { %3962 = vmatprep.subr.bf16.mxu1 %v4800_v0  ;;  %3976 = vmatprep.mubr.msk.bf16.mxu1 %vm4802_vm0, %v4800_v0 }
 0x174   :  { %3750 = vmatpush3.bf16.msra.mxu0 %v4396_v36  ;;  %v4470_v36 = vld [vmem:[#allocation6 + $0x168] ss:$20 sps:$4 sm:$0xff]  }
 0x175   :  { %3963 = vmatpush3.bf16.msra.mxu1 %v4397_v37  ;;  %3751 = vmatprep.subr.bf16.mxu0 %v4398_v38  ;;  %v4473_v37 = vld [vmem:[#allocation6 + $0x170] ss:$20 sps:$4 sm:$0xff]   ;;  %v4478_v38 = vld [vmem:[#allocation6 + $0x194] ss:$20 sps:$4 sm:$0xff]  }
 0x176   :  { %3964 = vmatprep.subr.bf16.mxu1 %v4800_v0 }
 0x178   :  { %3752 = vmatpush3.bf16.msra.mxu0 %v4399_v39  ;;  %v4481_v39 = vld [vmem:[#allocation6 + $0x19c] ss:$20 sps:$4 sm:$0xff]  }
 0x179   :  { %3965 = vmatpush3.bf16.msra.mxu1 %v4400_v40  ;;  %3753 = vmatprep.subr.bf16.mxu0 %v4401_v41  ;;  %v4476_v40 = vld [vmem:[#allocation6 + $0x190] ss:$20 sps:$4 sm:$0xff]   ;;  %v4479_v41 = vld [vmem:[#allocation6 + $0x198] ss:$20 sps:$4 sm:$0xff]  }
 0x17a   :  { %3966 = vmatprep.subr.bf16.mxu1 %v4800_v0 }
 0x17c   :  { %3754 = vmatpush3.bf16.msra.mxu0 %v4402_v42  ;;  %v4484_v42 = vld [vmem:[#allocation6 + $0x1bc] ss:$20 sps:$4 sm:$0xff]  }
 0x17d   :  { %3967 = vmatpush3.bf16.msra.mxu1 %v4403_v43  ;;  %3755 = vmatprep.subr.bf16.mxu0 %v4404_v44  ;;  %v4487_v43 = vld [vmem:[#allocation6 + $0x1c4] ss:$20 sps:$4 sm:$0xff]  }
 0x17e   :  { %3968 = vmatprep.subr.bf16.mxu1 %v4800_v0  ;;  %v4482_v44 = vld [vmem:[#allocation6 + $0x1b8] ss:$20 sps:$4 sm:$0xff]  }
 0x180   :  { %3756 = vmatpush3.bf16.msra.mxu0 %v4405_v45  ;;  %v4485_v45 = vld [vmem:[#allocation6 + $0x1c0] ss:$20 sps:$4 sm:$0xff]  }
 0x181   :  { %3969 = vmatpush3.bf16.msra.mxu1 %v4406_v46  ;;  %3757 = vmatprep.subr.bf16.mxu0 %v4407_v48  ;;  %v4490_v46 = vld [vmem:[#allocation6 + $0x1e4] ss:$20 sps:$4 sm:$0xff]   ;;  %v4493_v48 = vld [vmem:[#allocation6 + $0x1ec] ss:$20 sps:$4 sm:$0xff]  }
 0x182   :  { %3970 = vmatprep.subr.bf16.mxu1 %v4800_v0 }
 0x184   :  { %3758 = vmatpush3.bf16.msra.mxu0 %v4408_v49  ;;  %v4488_v49 = vld [vmem:[#allocation6 + $0x1e0] ss:$20 sps:$4 sm:$0xff]  }
 0x185   :  { %3971 = vmatpush3.bf16.msra.mxu1 %v4409_v50  ;;  %3759 = vmatprep.subr.bf16.mxu0 %v4410_v51  ;;  %v4491_v50 = vld [vmem:[#allocation6 + $0x1e8] ss:$20 sps:$4 sm:$0xff]   ;;  %v4496_v51 = vld [vmem:[#allocation6 + $0x20c] ss:$20 sps:$4 sm:$0xff]  }
 0x186   :  { %3972 = vmatprep.subr.bf16.mxu1 %v4800_v0 }
 0x188   :  { %3760 = vmatpush3.bf16.msra.mxu0 %v4411_v52  ;;  %v4499_v52 = vld [vmem:[#allocation6 + $0x214] ss:$20 sps:$4 sm:$0xff]  }
 0x189   :  { %3973 = vmatpush3.bf16.msra.mxu1 %v4412_v53  ;;  %3761 = vmatprep.subr.bf16.mxu0 %v4413_v54  ;;  %v4494_v53 = vld [vmem:[#allocation6 + $0x208] ss:$20 sps:$4 sm:$0xff]   ;;  %v4497_v54 = vld [vmem:[#allocation6 + $0x210] ss:$20 sps:$4 sm:$0xff]  }
 0x18a   :  { %3974 = vmatprep.subr.bf16.mxu1 %v4800_v0 }
 0x18c   :  { %3762 = vmatpush3.bf16.msra.mxu0 %v4414_v55  ;;  %v4502_v55 = vld [vmem:[#allocation6 + $0x234] ss:$20 sps:$4 sm:$0xff]  }
 0x18d   :  { %3975 = vmatpush3.bf16.msra.mxu1 %v4415_v56  ;;  %2696 = vmatprep.subr.bf16.mxu0 %v4418_v57  ;;  %v4505_v56 = vld [vmem:[#allocation6 + $0x23c] ss:$20 sps:$4 sm:$0xff]  }
 0x18e   :  { %2825 = vmatprep.subr.bf16.mxu1 %v4421_v58  ;;  %v4500_v57 = vld [vmem:[#allocation6 + $0x230] ss:$20 sps:$4 sm:$0xff]   ;;  %v4503_v58 = vld [vmem:[#allocation6 + $0x238] ss:$20 sps:$4 sm:$0xff]  }
 0x18f   :  { %1335 = vmatmul.mubr.bf16.vlgmr.msra.gmra.mrb[8].mxu0 %v4957_v47  ;;  %v4434_v47 = vld [vmem:[#allocation6 + $0x78] ss:$20 sps:$4 sm:$0xff]  }
 0x190   :  { %3977 = vmatmul.mubr.bf16.vlgmr.msra.gmra.mrb[8].mxu1 %v4967_v5  ;;  %2697 = vmatpush1.bf16.msra.mxu0 %v4416_v59  ;;  %v4437_v5 = vld [vmem:[#allocation6 + $0x80] ss:$20 sps:$4 sm:$0xff]   ;;  %v4508_v59 = vld [vmem:[#allocation6 + $0x25c] ss:$20 sps:$4 sm:$0xff]  }
 0x191   :  { %2826 = vmatpush1.bf16.msra.mxu1 %v4419_v60  ;;  %2698 = vmatprep.subr.bf16.mxu0 %v4424_v61  ;;  %v4511_v60 = vld [vmem:[#allocation6 + $0x264] ss:$20 sps:$4 sm:$0xff]  }
 0x192   :  { %2827 = vmatprep.subr.bf16.mxu1 %v4427_v62  ;;  %v4506_v61 = vld [vmem:[#allocation6 + $0x258] ss:$20 sps:$4 sm:$0xff]   ;;  %v4509_v62 = vld [vmem:[#allocation6 + $0x260] ss:$20 sps:$4 sm:$0xff]  }
 0x194   :  { %2699 = vmatpush1.bf16.msra.mxu0 %v4422_v63  ;;  %v4514_v63 = vld [vmem:[#allocation6 + $0x284] ss:$20 sps:$4 sm:$0xff]  }
 0x195   :  { %2828 = vmatpush1.bf16.msra.mxu1 %v4425_v1  ;;  %2700 = vmatprep.subr.bf16.mxu0 %v4430_v2  ;;  %v4517_v1 = vld [vmem:[#allocation6 + $0x28c] ss:$20 sps:$4 sm:$0xff]  }
 0x196   :  { %2829 = vmatprep.subr.bf16.mxu1 %v4433_v3  ;;  %v4987_v2 = vld [vmem:[%s5071_s5] sm:$0x1f]  ;;  %v495_v3 = vsub.s32 3, %v4931_v16 }
 0x198   :  { %2701 = vmatpush1.bf16.msra.mxu0 %v4428_v6  ;;  %v484_v6 = vrot.slane %v4987_v2, %v4934_v17 }
 0x199   :  { %2830 = vmatpush1.bf16.msra.mxu1 %v4431_v7  ;;  %2702 = vmatprep.subr.bf16.mxu0 %v4436_v8  ;;  %v492_v7 = vrot.slane %v4987_v2, %v4951_v29 }
 0x19a   :  { %2831 = vmatprep.subr.bf16.mxu1 %v4439_v9 }
 0x19c   :  { %2703 = vmatpush1.bf16.msra.mxu0 %v4434_v47  ;;  %v488_v47 = vrot.slane %v4987_v2, %v4940_v19 }
 0x19d   :  { %2832 = vmatpush1.bf16.msra.mxu1 %v4437_v5  ;;  %2704 = vmatprep.subr.bf16.mxu0 %v4442_v10  ;;  %v496_v5 = vrot.slane %v4987_v2, %v495_v3 }
 0x19e   :  { %2833 = vmatprep.subr.bf16.mxu1 %v4445_v11 }
 0x1a0   :  { %2705 = vmatpush1.bf16.msra.mxu0 %v4440_v12 }
 0x1a1   :  { %2834 = vmatpush1.bf16.msra.mxu1 %v4443_v13  ;;  %2706 = vmatprep.subr.bf16.mxu0 %v4448_v14 }
 0x1a2   :  { %2835 = vmatprep.subr.bf16.mxu1 %v4451_v15 }
 0x1a4   :  { %2707 = vmatpush1.bf16.msra.mxu0 %v4446_v18 }
 0x1a5   :  { %2836 = vmatpush1.bf16.msra.mxu1 %v4449_v20  ;;  %2708 = vmatprep.subr.bf16.mxu0 %v4454_v21 }
 0x1a6   :  { %2837 = vmatprep.subr.bf16.mxu1 %v4457_v22 }
 0x1a8   :  { %2709 = vmatpush1.bf16.msra.mxu0 %v4452_v23 }
 0x1a9   :  { %2838 = vmatpush1.bf16.msra.mxu1 %v4455_v24  ;;  %2710 = vmatprep.subr.bf16.mxu0 %v4460_v25 }
 0x1aa   :  { %2839 = vmatprep.subr.bf16.mxu1 %v4463_v26 }
 0x1ac   :  { %2711 = vmatpush1.bf16.msra.mxu0 %v4458_v27 }
 0x1ad   :  { %2840 = vmatpush1.bf16.msra.mxu1 %v4461_v28  ;;  %2712 = vmatprep.subr.bf16.mxu0 %v4466_v30 }
 0x1ae   :  { %2841 = vmatprep.subr.bf16.mxu1 %v4469_v31 }
 0x1b0   :  { %2713 = vmatpush1.bf16.msra.mxu0 %v4464_v32  ;;  %v4512_v32 = vld [vmem:[#allocation6 + $0x280] ss:$20 sps:$4 sm:$0xff]  }
 0x1b1   :  { %2842 = vmatpush1.bf16.msra.mxu1 %v4467_v33  ;;  %2714 = vmatprep.subr.bf16.mxu0 %v4472_v34  ;;  %v4515_v33 = vld [vmem:[#allocation6 + $0x288] ss:$20 sps:$4 sm:$0xff]   ;;  %v4520_v34 = vld [vmem:[#allocation6 + $0x2ac] ss:$20 sps:$4 sm:$0xff]  }
 0x1b2   :  { %2843 = vmatprep.subr.bf16.mxu1 %v4475_v35  ;;  %v4523_v35 = vld [vmem:[#allocation6 + $0x2b4] ss:$20 sps:$4 sm:$0xff]  }
 0x1b4   :  { %2715 = vmatpush1.bf16.msra.mxu0 %v4470_v36  ;;  %v4518_v36 = vld [vmem:[#allocation6 + $0x2a8] ss:$20 sps:$4 sm:$0xff]  }
 0x1b5   :  { %2844 = vmatpush1.bf16.msra.mxu1 %v4473_v37  ;;  %2716 = vmatprep.subr.bf16.mxu0 %v4478_v38  ;;  %v4521_v37 = vld [vmem:[#allocation6 + $0x2b0] ss:$20 sps:$4 sm:$0xff]   ;;  %v4526_v38 = vld [vmem:[#allocation6 + $0x2d4] ss:$20 sps:$4 sm:$0xff]  }
 0x1b6   :  { %2845 = vmatprep.subr.bf16.mxu1 %v4481_v39  ;;  %v4529_v39 = vld [vmem:[#allocation6 + $0x2dc] ss:$20 sps:$4 sm:$0xff]  }
 0x1b8   :  { %2717 = vmatpush1.bf16.msra.mxu0 %v4476_v40  ;;  %v4524_v40 = vld [vmem:[#allocation6 + $0x2d0] ss:$20 sps:$4 sm:$0xff]  }
 0x1b9   :  { %2846 = vmatpush1.bf16.msra.mxu1 %v4479_v41  ;;  %2718 = vmatprep.subr.bf16.mxu0 %v4484_v42  ;;  %v4527_v41 = vld [vmem:[#allocation6 + $0x2d8] ss:$20 sps:$4 sm:$0xff]   ;;  %v4532_v42 = vld [vmem:[#allocation6 + $0x2fc] ss:$20 sps:$4 sm:$0xff]  }
 0x1ba   :  { %2847 = vmatprep.subr.bf16.mxu1 %v4487_v43  ;;  %v4535_v43 = vld [vmem:[#allocation6 + $0x304] ss:$20 sps:$4 sm:$0xff]  }
 0x1bc   :  { %2719 = vmatpush1.bf16.msra.mxu0 %v4482_v44  ;;  %v4530_v44 = vld [vmem:[#allocation6 + $0x2f8] ss:$20 sps:$4 sm:$0xff]  }
 0x1bd   :  { %2848 = vmatpush1.bf16.msra.mxu1 %v4485_v45  ;;  %2720 = vmatprep.subr.bf16.mxu0 %v4490_v46  ;;  %v4533_v45 = vld [vmem:[#allocation6 + $0x300] ss:$20 sps:$4 sm:$0xff]   ;;  %v4538_v46 = vld [vmem:[#allocation6 + $0x324] ss:$20 sps:$4 sm:$0xff]  }
 0x1be   :  { %2849 = vmatprep.subr.bf16.mxu1 %v4493_v48  ;;  %v4541_v48 = vld [vmem:[#allocation6 + $0x32c] ss:$20 sps:$4 sm:$0xff]  }
 0x1c0   :  { %2721 = vmatpush1.bf16.msra.mxu0 %v4488_v49  ;;  %v4536_v49 = vld [vmem:[#allocation6 + $0x320] ss:$20 sps:$4 sm:$0xff]  }
 0x1c1   :  { %2850 = vmatpush1.bf16.msra.mxu1 %v4491_v50  ;;  %2722 = vmatprep.subr.bf16.mxu0 %v4496_v51  ;;  %v4539_v50 = vld [vmem:[#allocation6 + $0x328] ss:$20 sps:$4 sm:$0xff]   ;;  %v4544_v51 = vld [vmem:[#allocation6 + $0x34c] ss:$20 sps:$4 sm:$0xff]  }
 0x1c2   :  { %2851 = vmatprep.subr.bf16.mxu1 %v4499_v52  ;;  %v4547_v52 = vld [vmem:[#allocation6 + $0x354] ss:$20 sps:$4 sm:$0xff]  }
 0x1c4   :  { %2723 = vmatpush1.bf16.msra.mxu0 %v4494_v53  ;;  %v4542_v53 = vld [vmem:[#allocation6 + $0x348] ss:$20 sps:$4 sm:$0xff]  }
 0x1c5   :  { %2852 = vmatpush1.bf16.msra.mxu1 %v4497_v54  ;;  %2724 = vmatprep.subr.bf16.mxu0 %v4502_v55  ;;  %v4545_v54 = vld [vmem:[#allocation6 + $0x350] ss:$20 sps:$4 sm:$0xff]   ;;  %v4550_v55 = vld [vmem:[#allocation6 + $0x374] ss:$20 sps:$4 sm:$0xff]  }
 0x1c6   :  { %2853 = vmatprep.subr.bf16.mxu1 %v4505_v56  ;;  %v4553_v56 = vld [vmem:[#allocation6 + $0x37c] ss:$20 sps:$4 sm:$0xff]  }
 0x1c8   :  { %2725 = vmatpush1.bf16.msra.mxu0 %v4500_v57  ;;  %v499_v57 = vsub.s32 4, %v4931_v16 }
 0x1c9   :  { %2854 = vmatpush1.bf16.msra.mxu1 %v4503_v58  ;;  %2726 = vmatprep.subr.bf16.mxu0 %v4508_v59  ;;  %v4548_v58 = vld [vmem:[#allocation6 + $0x370] ss:$20 sps:$4 sm:$0xff]   ;;  %v4551_v59 = vld [vmem:[#allocation6 + $0x378] ss:$20 sps:$4 sm:$0xff]  }
 0x1ca   :  { %2855 = vmatprep.subr.bf16.mxu1 %v4511_v60  ;;  %v4556_v60 = vld [vmem:[#allocation6 + $0x39c] ss:$20 sps:$4 sm:$0xff]  }
 0x1cc   :  { %2727 = vmatpush1.bf16.msra.mxu0 %v4506_v61  ;;  %v4559_v61 = vld [vmem:[#allocation6 + $0x3a4] ss:$20 sps:$4 sm:$0xff]  }
 0x1cd   :  { %2856 = vmatpush1.bf16.msra.mxu1 %v4509_v62  ;;  %2739 = vmatprep.subr.bf16.mxu0 %v4514_v63  ;;  %v500_v63 = vrot.slane %v4987_v2, %v499_v57 }
 0x1ce   :  { %2868 = vmatprep.subr.bf16.mxu1 %v4517_v1 }
 0x242   :  { %v1207_v8 = vpop.f32.mrb[4].mxu0  ;;  %v1293_v9 = vpop.f32.mrb[4].mxu1 }
 0x243   :  { %v1209_v10 = vpop.f32.mrb[5].mxu0  ;;  %v1295_v11 = vpop.f32.mrb[5].mxu1  ;;  %v4195_v14 = vadd.f32 %v1207_v8, %v484_v6  ;;  %v4199_v15 = vadd.f32 %v1293_v9, %v492_v7 }
 0x244   :  { %v1211_v12 = vpop.f32.mrb[6].mxu0  ;;  %v1297_v13 = vpop.f32.mrb[6].mxu1  ;;  %v4196_v23 = vadd.f32 %v1209_v10, %v488_v47  ;;  %v4200_v24 = vadd.f32 %v1295_v11, %v496_v5 }
 0x245   :  { %v4197_v18 = vadd.f32 %v1211_v12, %v484_v6  ;;  %v4201_v20 = vadd.f32 %v1297_v13, %v492_v7  ;;  %v1213_v21 = vpop.f32.mrb[7].mxu0  ;;  %v1299_v22 = vpop.f32.mrb[7].mxu1  ;;  %v4562_v12 = vld [vmem:[#allocation6 + $0x3c4] ss:$20 sps:$4 sm:$0xff]   ;;  %v4565_v13 = vld [vmem:[#allocation6 + $0x3cc] ss:$20 sps:$4 sm:$0xff]  }
 0x246   :  { %v4198_v25 = vadd.f32 %v1213_v21, %v488_v47  ;;  %v4202_v26 = vadd.f32 %v1299_v22, %v496_v5  ;;  %v4554_v47 = vld [vmem:[#allocation6 + $0x398] ss:$20 sps:$4 sm:$0xff]   ;;  %v4557_v5 = vld [vmem:[#allocation6 + $0x3a0] ss:$20 sps:$4 sm:$0xff]   ;;  %v4563_v22 = vld [vmem:[#allocation6 + $0x3c8] ss:$20 sps:$4 sm:$0xff]  }
 0x247   :  { %v4999_v27 = vpack.c.bf16 %v4197_v18, %v4195_v14  ;;  %v5001_v28 = vpack.c.bf16 %v4201_v20, %v4199_v15  ;;  %v4560_v21 = vld [vmem:[#allocation6 + $0x3c0] ss:$20 sps:$4 sm:$0xff]  }
 0x248   :  { %v5003_v30 = vpack.c.bf16 %v4198_v25, %v4196_v23  ;;  %v5005_v31 = vpack.c.bf16 %v4202_v26, %v4200_v24  ;;  %v4568_v23 = vld [vmem:[#allocation6 + $0x3ec] ss:$20 sps:$4 sm:$0xff]   ;;  %v4571_v24 = vld [vmem:[#allocation6 + $0x3f4] ss:$20 sps:$4 sm:$0xff]  }
 0x24a   :  { %2728 = vmatprep.mubr.bf16.mxu0 %v5003_v30  ;;  %2857 = vmatprep.mubr.bf16.mxu1 %v5003_v30 }
 0x24b   :  { %2729 = vmatmul.mubr.bf16.vlgmr.msra.gmra.mrb[12].mxu0 %v4999_v27  ;;  %2858 = vmatmul.mubr.bf16.vlgmr.msra.gmra.mrb[12].mxu1 %v4999_v27 }
 0x24c   :  { %2740 = vmatpush1.bf16.msra.mxu0 %v4512_v32  ;;  %2869 = vmatpush1.bf16.msra.mxu1 %v4515_v33  ;;  %v4566_v32 = vld [vmem:[#allocation6 + $0x3e8] ss:$20 sps:$4 sm:$0xff]   ;;  %v4569_v33 = vld [vmem:[#allocation6 + $0x3f0] ss:$20 sps:$4 sm:$0xff]  }
 0x24d   :  { %2771 = vmatprep.mubr.bf16.mxu0 %v5005_v31  ;;  %2900 = vmatprep.mubr.bf16.mxu1 %v5005_v31 }
 0x24e   :  { %2741 = vmatprep.subr.bf16.mxu0 %v4520_v34  ;;  %2870 = vmatprep.subr.bf16.mxu1 %v4523_v35  ;;  %v4574_v34 = vld [vmem:[#allocation6 + $0x414] ss:$20 sps:$4 sm:$0xff]   ;;  %v4577_v35 = vld [vmem:[#allocation6 + $0x41c] ss:$20 sps:$4 sm:$0xff]  }
 0x250   :  { %2742 = vmatpush1.bf16.msra.mxu0 %v4518_v36  ;;  %2871 = vmatpush1.bf16.msra.mxu1 %v4521_v37  ;;  %v4572_v36 = vld [vmem:[#allocation6 + $0x410] ss:$20 sps:$4 sm:$0xff]   ;;  %v4575_v37 = vld [vmem:[#allocation6 + $0x418] ss:$20 sps:$4 sm:$0xff]  }
 0x251   :  { %2743 = vmatprep.subr.bf16.mxu0 %v4526_v38  ;;  %2872 = vmatprep.subr.bf16.mxu1 %v4529_v39  ;;  %v4580_v38 = vld [vmem:[#allocation6 + $0x43c] ss:$20 sps:$4 sm:$0xff]   ;;  %v4583_v39 = vld [vmem:[#allocation6 + $0x444] ss:$20 sps:$4 sm:$0xff]  }
 0x254   :  { %2744 = vmatpush1.bf16.msra.mxu0 %v4524_v40  ;;  %2873 = vmatpush1.bf16.msra.mxu1 %v4527_v41  ;;  %v4578_v40 = vld [vmem:[#allocation6 + $0x438] ss:$20 sps:$4 sm:$0xff]   ;;  %v4581_v41 = vld [vmem:[#allocation6 + $0x440] ss:$20 sps:$4 sm:$0xff]  }
 0x255   :  { %2745 = vmatprep.subr.bf16.mxu0 %v4532_v42  ;;  %2874 = vmatprep.subr.bf16.mxu1 %v4535_v43  ;;  %v4586_v42 = vld [vmem:[#allocation6 + $0x464] ss:$20 sps:$4 sm:$0xff]   ;;  %v4589_v43 = vld [vmem:[#allocation6 + $0x46c] ss:$20 sps:$4 sm:$0xff]  }
 0x258   :  { %2746 = vmatpush1.bf16.msra.mxu0 %v4530_v44  ;;  %2875 = vmatpush1.bf16.msra.mxu1 %v4533_v45  ;;  %v4584_v44 = vld [vmem:[#allocation6 + $0x460] ss:$20 sps:$4 sm:$0xff]   ;;  %v4587_v45 = vld [vmem:[#allocation6 + $0x468] ss:$20 sps:$4 sm:$0xff]  }
 0x259   :  { %2747 = vmatprep.subr.bf16.mxu0 %v4538_v46  ;;  %2876 = vmatprep.subr.bf16.mxu1 %v4541_v48  ;;  %v4592_v46 = vld [vmem:[#allocation6 + $0x48c] ss:$20 sps:$4 sm:$0xff]   ;;  %v4595_v48 = vld [vmem:[#allocation6 + $0x494] ss:$20 sps:$4 sm:$0xff]  }
 0x25c   :  { %2748 = vmatpush1.bf16.msra.mxu0 %v4536_v49  ;;  %2877 = vmatpush1.bf16.msra.mxu1 %v4539_v50  ;;  %v4590_v49 = vld [vmem:[#allocation6 + $0x488] ss:$20 sps:$4 sm:$0xff]   ;;  %v4593_v50 = vld [vmem:[#allocation6 + $0x490] ss:$20 sps:$4 sm:$0xff]  }
 0x25d   :  { %2749 = vmatprep.subr.bf16.mxu0 %v4544_v51  ;;  %2878 = vmatprep.subr.bf16.mxu1 %v4547_v52  ;;  %v4598_v51 = vld [vmem:[#allocation6 + $0x4b4] ss:$20 sps:$4 sm:$0xff]   ;;  %v4601_v52 = vld [vmem:[#allocation6 + $0x4bc] ss:$20 sps:$4 sm:$0xff]  }
 0x260   :  { %2750 = vmatpush1.bf16.msra.mxu0 %v4542_v53  ;;  %2879 = vmatpush1.bf16.msra.mxu1 %v4545_v54  ;;  %v4596_v53 = vld [vmem:[#allocation6 + $0x4b0] ss:$20 sps:$4 sm:$0xff]   ;;  %v4599_v54 = vld [vmem:[#allocation6 + $0x4b8] ss:$20 sps:$4 sm:$0xff]  }
 0x261   :  { %2751 = vmatprep.subr.bf16.mxu0 %v4550_v55  ;;  %2880 = vmatprep.subr.bf16.mxu1 %v4553_v56  ;;  %v4604_v55 = vld [vmem:[#allocation6 + $0x4dc] ss:$20 sps:$4 sm:$0xff]   ;;  %v4607_v56 = vld [vmem:[#allocation6 + $0x4e4] ss:$20 sps:$4 sm:$0xff]  }
 0x262   :  { %v3763_v62 = vpop.f32.mrb[8].mxu0 }
 0x263   :  { %v1377_v1 = vpop.f32.mrb[8].mxu1  ;;  %v3764_v6 = vpop.f32.mrb[9].mxu0 }
 0x264   :  { %v3765_v7 = vadd.f32 %v3764_v6, %v3763_v62  ;;  %v3978_v8 = vpop.f32.mrb[9].mxu1  ;;  %2752 = vmatpush1.bf16.msra.mxu0 %v4548_v58  ;;  %2881 = vmatpush1.bf16.msra.mxu1 %v4551_v59  ;;  %v3766_v9 = vpop.f32.mrb[10].mxu0  ;;  %v4602_v58 = vld [vmem:[#allocation6 + $0x4d8] ss:$20 sps:$4 sm:$0xff]   ;;  %v4605_v59 = vld [vmem:[#allocation6 + $0x4e0] ss:$20 sps:$4 sm:$0xff]  }
 0x265   :  { %v1380_v10 = vpop.f32.mrb[10].mxu1  ;;  %v3767_v11 = vpop.f32.mrb[11].mxu0  ;;  %2753 = vmatprep.subr.bf16.mxu0 %v4556_v60  ;;  %2882 = vmatprep.subr.bf16.mxu1 %v4559_v61  ;;  %v4610_v60 = vld [vmem:[#allocation6 + $0x504] ss:$20 sps:$4 sm:$0xff]   ;;  %v4613_v61 = vld [vmem:[#allocation6 + $0x50c] ss:$20 sps:$4 sm:$0xff]  }
 0x266   :  { %v1337_v14 = vadd.f32 %v3765_v7, %v500_v63  ;;  %v3768_v15 = vadd.f32 %v3767_v11, %v3766_v9  ;;  %v3979_v18 = vpop.f32.mrb[11].mxu1  ;;  %v4608_v62 = vld [vmem:[#allocation6 + $0x500] ss:$20 sps:$4 sm:$0xff]   ;;  %v4614_v7 = vld [vmem:[#allocation6 + $0x528] ss:$20 sps:$4 sm:$0xff]  }
 0x267   :  { %v4619_v6 = vld [vmem:[#allocation6 + $0x534] ss:$20 sps:$4 sm:$0xff]   ;;  %v4617_v8 = vld [vmem:[#allocation6 + $0x530] ss:$20 sps:$4 sm:$0xff]   ;;  %v4637_v18 = vld [vmem:[#allocation6 + $0x5ac] ss:$20 sps:$4 sm:$0xff]  }
 0x268   :  { %v1378_v20 = vadd.f32 %v1377_v1, %v1337_v14  ;;  %v1340_v2 = vadd.f32 %v3768_v15, %v500_v63  ;;  %2754 = vmatpush1.bf16.msra.mxu0 %v4554_v47  ;;  %2883 = vmatpush1.bf16.msra.mxu1 %v4557_v5  ;;  %v4611_v63 = vld [vmem:[#allocation6 + $0x508] ss:$20 sps:$4 sm:$0xff]   ;;  %v4616_v1 = vld [vmem:[#allocation6 + $0x52c] ss:$20 sps:$4 sm:$0xff]   ;;  %v4620_v5 = vld [vmem:[#allocation6 + $0x550] ss:$20 sps:$4 sm:$0xff]  }
 0x269   :  { %2755 = vmatprep.subr.bf16.mxu0 %v4562_v12  ;;  %2884 = vmatprep.subr.bf16.mxu1 %v4565_v13  ;;  %v4622_v9 = vld [vmem:[#allocation6 + $0x554] ss:$20 sps:$4 sm:$0xff]   ;;  %v4625_v47 = vld [vmem:[#allocation6 + $0x55c] ss:$20 sps:$4 sm:$0xff]   ;;  %v4631_v12 = vld [vmem:[#allocation6 + $0x584] ss:$20 sps:$4 sm:$0xff]  }
 0x26a   :  { %v1381_v25 = vadd.f32 %v1380_v10, %v1340_v2  ;;  %v4623_v10 = vld [vmem:[#allocation6 + $0x558] ss:$20 sps:$4 sm:$0xff]   ;;  %v4628_v11 = vld [vmem:[#allocation6 + $0x57c] ss:$20 sps:$4 sm:$0xff]   ;;  %v4629_v14 = vld [vmem:[#allocation6 + $0x580] ss:$20 sps:$4 sm:$0xff]  }
 0x26b   :  { %v4626_v13 = vld [vmem:[#allocation6 + $0x578] ss:$20 sps:$4 sm:$0xff]  }
 0x26c   :  { %v5017_v26 = vpack.c.bf16 %v1381_v25, %v1378_v20  ;;  %2756 = vmatpush1.bf16.msra.mxu0 %v4560_v21  ;;  %2885 = vmatpush1.bf16.msra.mxu1 %v4563_v22  ;;  %v4634_v15 = vld [vmem:[#allocation6 + $0x5a4] ss:$20 sps:$4 sm:$0xff]   ;;  %v4632_v20 = vld [vmem:[#allocation6 + $0x5a0] ss:$20 sps:$4 sm:$0xff]   ;;  %v4638_v22 = vld [vmem:[#allocation6 + $0x5c8] ss:$20 sps:$4 sm:$0xff]  }
 0x26d   :  { %2757 = vmatprep.subr.bf16.mxu0 %v4568_v23  ;;  %2886 = vmatprep.subr.bf16.mxu1 %v4571_v24  ;;  %v4640_v2 = vld [vmem:[#allocation6 + $0x5cc] ss:$20 sps:$4 sm:$0xff]   ;;  %v4643_v21 = vld [vmem:[#allocation6 + $0x5d4] ss:$20 sps:$4 sm:$0xff]   ;;  %v4641_v23 = vld [vmem:[#allocation6 + $0x5d0] ss:$20 sps:$4 sm:$0xff]  }
 0x26e   :  { %v4646_v24 = vld [vmem:[#allocation6 + $0x5f4] ss:$20 sps:$4 sm:$0xff]   ;;  %v4649_v25 = vld [vmem:[#allocation6 + $0x5fc] ss:$20 sps:$4 sm:$0xff]  }
 0x270   :  { %2758 = vmatpush1.bf16.msra.mxu0 %v4566_v32  ;;  %2887 = vmatpush1.bf16.msra.mxu1 %v4569_v33  ;;  %v4644_v32 = vld [vmem:[#allocation6 + $0x5f0] ss:$20 sps:$4 sm:$0xff]   ;;  %v4647_v33 = vld [vmem:[#allocation6 + $0x5f8] ss:$20 sps:$4 sm:$0xff]  }
 0x271   :  { %2759 = vmatprep.subr.bf16.mxu0 %v4574_v34  ;;  %2888 = vmatprep.subr.bf16.mxu1 %v4577_v35  ;;  %v4652_v34 = vld [vmem:[#allocation6 + $0x61c] ss:$20 sps:$4 sm:$0xff]   ;;  %v4655_v35 = vld [vmem:[#allocation6 + $0x624] ss:$20 sps:$4 sm:$0xff]  }
 0x274   :  { %2760 = vmatpush1.bf16.msra.mxu0 %v4572_v36  ;;  %2889 = vmatpush1.bf16.msra.mxu1 %v4575_v37  ;;  %v4650_v36 = vld [vmem:[#allocation6 + $0x618] ss:$20 sps:$4 sm:$0xff]   ;;  %v4653_v37 = vld [vmem:[#allocation6 + $0x620] ss:$20 sps:$4 sm:$0xff]  }
 0x275   :  { %2761 = vmatprep.subr.bf16.mxu0 %v4580_v38  ;;  %2890 = vmatprep.subr.bf16.mxu1 %v4583_v39  ;;  %v4656_v38 = vld [vmem:[#allocation6 + $0x150] ss:$20 sps:$4 sm:$0xff]  }
 0x276   :  { %v4657_v39 = vld [vmem:[#allocation6 + $0x3d0] ss:$20 sps:$4 sm:$0xff]  }
 0x278   :  { %2762 = vmatpush1.bf16.msra.mxu0 %v4578_v40  ;;  %2891 = vmatpush1.bf16.msra.mxu1 %v4581_v41  ;;  %v4658_v40 = vld [vmem:[#allocation6 + $0x10] ss:$20 sps:$4 sm:$0xff]  }
 0x279   :  { %2763 = vmatprep.subr.bf16.mxu0 %v4586_v42  ;;  %2892 = vmatprep.subr.bf16.mxu1 %v4589_v43  ;;  %v4659_v41 = vld [vmem:[#allocation6 + $0x290] ss:$20 sps:$4 sm:$0xff]   ;;  %v4660_v42 = vld [vmem:[#allocation6 + $0x178] ss:$20 sps:$4 sm:$0xff]  }
 0x27a   :  { %v4661_v43 = vld [vmem:[#allocation6 + $0x3f8] ss:$20 sps:$4 sm:$0xff]  }
 0x27c   :  { %2764 = vmatpush1.bf16.msra.mxu0 %v4584_v44  ;;  %2893 = vmatpush1.bf16.msra.mxu1 %v4587_v45  ;;  %v4662_v44 = vld [vmem:[#allocation6 + $0x38] ss:$20 sps:$4 sm:$0xff]  }
 0x27d   :  { %2765 = vmatprep.subr.bf16.mxu0 %v4592_v46  ;;  %2894 = vmatprep.subr.bf16.mxu1 %v4595_v48  ;;  %v4663_v45 = vld [vmem:[#allocation6 + $0x2b8] ss:$20 sps:$4 sm:$0xff]   ;;  %v4664_v46 = vld [vmem:[#allocation6 + $0x1a0] ss:$20 sps:$4 sm:$0xff]  }
 0x27e   :  { %v4665_v48 = vld [vmem:[#allocation6 + $0x420] ss:$20 sps:$4 sm:$0xff]  }
 0x280   :  { %2766 = vmatpush1.bf16.msra.mxu0 %v4590_v49  ;;  %2895 = vmatpush1.bf16.msra.mxu1 %v4593_v50  ;;  %v4666_v49 = vld [vmem:[#allocation6 + $0x60] ss:$20 sps:$4 sm:$0xff]  }
 0x281   :  { %2767 = vmatprep.subr.bf16.mxu0 %v4598_v51  ;;  %2896 = vmatprep.subr.bf16.mxu1 %v4601_v52  ;;  %v4667_v50 = vld [vmem:[#allocation6 + $0x2e0] ss:$20 sps:$4 sm:$0xff]   ;;  %v4668_v51 = vld [vmem:[#allocation6 + $0x1c8] ss:$20 sps:$4 sm:$0xff]  }
 0x282   :  { %v4669_v52 = vld [vmem:[#allocation6 + $0x448] ss:$20 sps:$4 sm:$0xff]  }
 0x284   :  { %2768 = vmatpush1.bf16.msra.mxu0 %v4596_v53  ;;  %2897 = vmatpush1.bf16.msra.mxu1 %v4599_v54  ;;  %v4670_v53 = vld [vmem:[#allocation6 + $0x88] ss:$20 sps:$4 sm:$0xff]   ;;  %v4672_v54 = vld [vmem:[#allocation6 + $0x1f0] ss:$20 sps:$4 sm:$0xff]  }
 0x285   :  { %2769 = vmatprep.subr.bf16.mxu0 %v4604_v55  ;;  %2898 = vmatprep.subr.bf16.mxu1 %v4607_v56  ;;  %v4674_v55 = vld [vmem:[#allocation6 + $0xb0] ss:$20 sps:$4 sm:$0xff]  }
 0x286   :  { %v4675_v56 = vld [vmem:[#allocation6 + $0x330] ss:$20 sps:$4 sm:$0xff]  }
 0x288   :  { %2770 = vmatpush1.bf16.msra.mxu0 %v4602_v58  ;;  %2899 = vmatpush1.bf16.msra.mxu1 %v4605_v59  ;;  %v4676_v58 = vld [vmem:[#allocation6 + $0x218] ss:$20 sps:$4 sm:$0xff]  }
 0x289   :  { %2782 = vmatprep.subr.bf16.mxu0 %v4610_v60  ;;  %2911 = vmatprep.subr.bf16.mxu1 %v4613_v61  ;;  %v4677_v59 = vld [vmem:[#allocation6 + $0x498] ss:$20 sps:$4 sm:$0xff]  }
 0x28a   :  { %v4678_v60 = vld [vmem:[#allocation6 + $0xd8] ss:$20 sps:$4 sm:$0xff]  }
 0x28b   :  { %2772 = vmatmul.mubr.bf16.vlgmr.msra.gmra.mrb[12].mxu0 %v5001_v28  ;;  %2901 = vmatmul.mubr.bf16.vlgmr.msra.gmra.mrb[12].mxu1 %v5001_v28  ;;  %v4679_v61 = vld [vmem:[#allocation6 + $0x358] ss:$20 sps:$4 sm:$0xff]  }
 0x28c   :  { %2783 = vmatpush1.bf16.msra.mxu0 %v4608_v62  ;;  %2912 = vmatpush1.bf16.msra.mxu1 %v4611_v63  ;;  %v4680_v62 = vld [vmem:[#allocation6 + $0x240] ss:$20 sps:$4 sm:$0xff]  }
 0x28d   :  { %2784 = vmatprep.subr.bf16.mxu0 %v4616_v1  ;;  %2913 = vmatprep.subr.bf16.mxu1 %v4619_v6  ;;  %v4681_v63 = vld [vmem:[#allocation6 + $0x4c0] ss:$20 sps:$4 sm:$0xff]  }
 0x28e   :  { %2814 = vmatprep.mubr.bf16.mxu0 %v4801_v4  ;;  %2943 = vmatprep.mubr.bf16.mxu1 %v4801_v4  ;;  %v4635_v4 = vld [vmem:[#allocation6 + $0x5a8] ss:$20 sps:$4 sm:$0xff]   ;;  %v4682_v1 = vld [vmem:[#allocation6 + $0x100] ss:$20 sps:$4 sm:$0xff]  }
 0x28f   :  { %v4683_v6 = vld [vmem:[#allocation6 + $0x380] ss:$20 sps:$4 sm:$0xff]  }
 0x290   :  { %2785 = vmatpush1.bf16.msra.mxu0 %v4614_v7  ;;  %2914 = vmatpush1.bf16.msra.mxu1 %v4617_v8  ;;  %v4684_v7 = vld [vmem:[#allocation6 + $0x268] ss:$20 sps:$4 sm:$0xff]  }
 0x291   :  { %2786 = vmatprep.subr.bf16.mxu0 %v4622_v9  ;;  %2915 = vmatprep.subr.bf16.mxu1 %v4625_v47  ;;  %v4685_v8 = vld [vmem:[#allocation6 + $0x4e8] ss:$20 sps:$4 sm:$0xff]   ;;  %v3103_v9 = vld [vmem:[#allocation7 + $0x80] sm:$0xff] }
 0x292   :  { %v3104_v47 = vld [vmem:[#allocation7 + $0x88] sm:$0xff] }
 0x294   :  { %2787 = vmatpush1.bf16.msra.mxu0 %v4620_v5  ;;  %2916 = vmatpush1.bf16.msra.mxu1 %v4623_v10  ;;  %v4686_v5 = vld [vmem:[#allocation6 + $0x128] ss:$20 sps:$4 sm:$0xff]  }
 0x295   :  { %2788 = vmatprep.subr.bf16.mxu0 %v4628_v11  ;;  %2917 = vmatprep.subr.bf16.mxu1 %v4631_v12  ;;  %v4687_v10 = vld [vmem:[#allocation6 + $0x3a8] ss:$20 sps:$4 sm:$0xff]   ;;  %v4099_v11 = vpack.c.bf16 %v3104_v47, %v3103_v9  ;;  %v3087_v12 = vld [vmem:[#allocation7] sm:$0xff] }
 0x298   :  { %2789 = vmatpush1.bf16.msra.mxu0 %v4626_v13  ;;  %2918 = vmatpush1.bf16.msra.mxu1 %v4629_v14  ;;  %v3088_v13 = vld [vmem:[#allocation7 + $0x8] sm:$0xff]  ;;  %v4688_v14 = vld [vmem:[#allocation6 + $0x510] ss:$20 sps:$4 sm:$0xff]  }
 0x299   :  { %2790 = vmatprep.subr.bf16.mxu0 %v4634_v15  ;;  %2919 = vmatprep.subr.bf16.mxu1 %v4637_v18  ;;  %v3105_v15 = vld [vmem:[#allocation7 + $0x90] sm:$0xff]  ;;  %v3106_v18 = vld [vmem:[#allocation7 + $0x98] sm:$0xff] }
 0x29c   :  { %2791 = vmatpush1.bf16.msra.mxu0 %v4632_v20  ;;  %2920 = vmatpush1.bf16.msra.mxu1 %v4635_v4  ;;  %v4101_v20 = vpack.c.bf16 %v3088_v13, %v3087_v12  ;;  %v4103_v4 = vpack.c.bf16 %v3106_v18, %v3105_v15  ;;  %v3140_v12 = vld [vmem:[#allocation7 + $0x1a8] sm:$0xff]  ;;  %v3141_v18 = vld [vmem:[#allocation7 + $0x1b0] sm:$0xff] }
 0x29d   :  { %2792 = vmatprep.subr.bf16.mxu0 %v4640_v2  ;;  %2921 = vmatprep.subr.bf16.mxu1 %v4643_v21  ;;  %v3089_v2 = vld [vmem:[#allocation7 + $0x10] sm:$0xff]  ;;  %v3090_v21 = vld [vmem:[#allocation7 + $0x18] sm:$0xff]  ;;  %v3124_v15 = vld [vmem:[#allocation7 + $0x128] sm:$0xff] }
 0x2a0   :  { %2793 = vmatpush1.bf16.msra.mxu0 %v4638_v22  ;;  %2922 = vmatpush1.bf16.msra.mxu1 %v4641_v23  ;;  %v4689_v22 = vld [vmem:[#allocation6 + $0x538] ss:$20 sps:$4 sm:$0xff]   ;;  %v3107_v23 = vld [vmem:[#allocation7 + $0xa0] sm:$0xff] }
 0x2a1   :  { %2794 = vmatprep.subr.bf16.mxu0 %v4646_v24  ;;  %2923 = vmatprep.subr.bf16.mxu1 %v4649_v25  ;;  %v3108_v24 = vld [vmem:[#allocation7 + $0xa8] sm:$0xff]  ;;  %v4105_v25 = vpack.c.bf16 %v3090_v21, %v3089_v2  ;;  %v3125_v21 = vld [vmem:[#allocation7 + $0x130] sm:$0xff] }
 0x2a4   :  { %2795 = vmatpush1.bf16.msra.mxu0 %v4644_v32  ;;  %2924 = vmatpush1.bf16.msra.mxu1 %v4647_v33  ;;  %v4107_v32 = vpack.c.bf16 %v3108_v24, %v3107_v23  ;;  %v3091_v33 = vld [vmem:[#allocation7 + $0x20] sm:$0xff]  ;;  %v3144_v24 = vld [vmem:[#allocation7 + $0x1c8] sm:$0xff] }
 0x2a5   :  { %2796 = vmatprep.subr.bf16.mxu0 %v4652_v34  ;;  %2925 = vmatprep.subr.bf16.mxu1 %v4655_v35  ;;  %v4690_v34 = vld [vmem:[#allocation6 + $0x560] ss:$20 sps:$4 sm:$0xff]  }
 0x2a6   :  { %v3109_v35 = vld [vmem:[#allocation7 + $0xb0] sm:$0xff]  ;;  %v3143_v23 = vld [vmem:[#allocation7 + $0x1c0] sm:$0xff] }
 0x2a8   :  { %2797 = vmatpush1.bf16.msra.mxu0 %v4650_v36  ;;  %2926 = vmatpush1.bf16.msra.mxu1 %v4653_v37  ;;  %v3110_v36 = vld [vmem:[#allocation7 + $0xb8] sm:$0xff] }
 0x2a9   :  { %3778 = vmatprep.subr.bf16.mxu0 %v4656_v38  ;;  %3800 = vmatprep.subr.bf16.mxu1 %v4657_v39  ;;  %v4111_v37 = vpack.c.bf16 %v3110_v36, %v3109_v35  ;;  %v3093_v38 = vld [vmem:[#allocation7 + $0x30] sm:$0xff]  ;;  %v3094_v39 = vld [vmem:[#allocation7 + $0x38] sm:$0xff] }
 0x2ab   :  { %2815 = vmatmul.mubr.bf16.vlgmr.msra.gmra.mrb[12].mxu0 %v5017_v26  ;;  %2944 = vmatmul.mubr.bf16.vlgmr.msra.gmra.mrb[12].mxu1 %v5017_v26 }
 0x2ac   :  { %3779 = vmatpush3.bf16.msra.mxu0 %v4658_v40  ;;  %2986 = vmatprep.mubr.bf16.mxu0 %v5003_v30  ;;  %v4671_v30 = vld [vmem:[#allocation6 + $0x308] ss:$20 sps:$4 sm:$0xff]  }
 0x2ad   :  { %3801 = vmatpush3.bf16.msra.mxu1 %v4659_v41  ;;  %3027 = vmatprep.mubr.bf16.mxu1 %v5005_v31  ;;  %v4673_v31 = vld [vmem:[#allocation6 + $0x470] ss:$20 sps:$4 sm:$0xff]   ;;  %v4691_v40 = vld [vmem:[#allocation6 + $0x588] ss:$20 sps:$4 sm:$0xff]  }
 0x2ae   :  { %3780 = vmatprep.subr.bf16.mxu0 %v4660_v42  ;;  %3802 = vmatprep.subr.bf16.mxu1 %v4661_v43  ;;  %v3111_v41 = vld [vmem:[#allocation7 + $0xc0] sm:$0xff]  ;;  %v3112_v42 = vld [vmem:[#allocation7 + $0xc8] sm:$0xff]  ;;  %v4113_v43 = vpack.c.bf16 %v3094_v39, %v3093_v38 }
 0x2af   :  { %v3147_v38 = vld [vmem:[#allocation7 + $0x1e0] sm:$0xff]  ;;  %v3148_v39 = vld [vmem:[#allocation7 + $0x1e8] sm:$0xff] }
 0x2b0   :  { %3781 = vmatpush3.bf16.msra.mxu0 %v4662_v44  ;;  %v4115_v44 = vpack.c.bf16 %v3112_v42, %v3111_v41  ;;  %v3099_v41 = vld [vmem:[#allocation7 + $0x60] sm:$0xff]  ;;  %v3100_v42 = vld [vmem:[#allocation7 + $0x68] sm:$0xff] }
 0x2b1   :  { %3803 = vmatpush3.bf16.msra.mxu1 %v4663_v45  ;;  %3782 = vmatprep.subr.bf16.mxu0 %v4664_v46  ;;  %v3095_v45 = vld [vmem:[#allocation7 + $0x40] sm:$0xff]  ;;  %v3096_v46 = vld [vmem:[#allocation7 + $0x48] sm:$0xff] }
 0x2b2   :  { %3804 = vmatprep.subr.bf16.mxu1 %v4665_v48  ;;  %v4692_v48 = vld [vmem:[#allocation6 + $0x5b0] ss:$20 sps:$4 sm:$0xff]  }
 0x2b4   :  { %3783 = vmatpush3.bf16.msra.mxu0 %v4666_v49  ;;  %v3113_v49 = vld [vmem:[#allocation7 + $0xd0] sm:$0xff] }
 0x2b5   :  { %3805 = vmatpush3.bf16.msra.mxu1 %v4667_v50  ;;  %3784 = vmatprep.subr.bf16.mxu0 %v4668_v51  ;;  %v3114_v50 = vld [vmem:[#allocation7 + $0xd8] sm:$0xff]  ;;  %v4117_v51 = vpack.c.bf16 %v3096_v46, %v3095_v45  ;;  %v3131_v45 = vld [vmem:[#allocation7 + $0x160] sm:$0xff]  ;;  %v3132_v46 = vld [vmem:[#allocation7 + $0x168] sm:$0xff] }
 0x2b6   :  { %3806 = vmatprep.subr.bf16.mxu1 %v4669_v52  ;;  %v4119_v52 = vpack.c.bf16 %v3114_v50, %v3113_v49  ;;  %v3118_v49 = vld [vmem:[#allocation7 + $0xf8] sm:$0xff]  ;;  %v3149_v50 = vld [vmem:[#allocation7 + $0x1f0] sm:$0xff] }
 0x2b8   :  { %3785 = vmatpush3.bf16.msra.mxu0 %v4670_v53  ;;  %v3097_v53 = vld [vmem:[#allocation7 + $0x50] sm:$0xff] }
 0x2b9   :  { %3807 = vmatpush3.bf16.msra.mxu1 %v4671_v30  ;;  %3786 = vmatprep.subr.bf16.mxu0 %v4672_v54  ;;  %v3098_v30 = vld [vmem:[#allocation7 + $0x58] sm:$0xff] }
 0x2ba   :  { %3808 = vmatprep.subr.bf16.mxu1 %v4673_v31  ;;  %v4693_v54 = vld [vmem:[#allocation6 + $0x5d8] ss:$20 sps:$4 sm:$0xff]   ;;  %v3115_v31 = vld [vmem:[#allocation7 + $0xe0] sm:$0xff] }
 0x2bc   :  { %3787 = vmatpush3.bf16.msra.mxu0 %v4674_v55  ;;  %v3116_v55 = vld [vmem:[#allocation7 + $0xe8] sm:$0xff] }
 0x2bd   :  { %3809 = vmatpush3.bf16.msra.mxu1 %v4675_v56  ;;  %3788 = vmatprep.subr.bf16.mxu0 %v4676_v58  ;;  %v4121_v56 = vpack.c.bf16 %v3098_v30, %v3097_v53  ;;  %v4123_v58 = vpack.c.bf16 %v3116_v55, %v3115_v31  ;;  %v3150_v53 = vld [vmem:[#allocation7 + $0x1f8] sm:$0xff]  ;;  %v3101_v30 = vld [vmem:[#allocation7 + $0x70] sm:$0xff] }
 0x2be   :  { %3810 = vmatprep.subr.bf16.mxu1 %v4677_v59  ;;  %v4694_v59 = vld [vmem:[#allocation6 + $0x600] ss:$20 sps:$4 sm:$0xff]   ;;  %v4159_v31 = vpack.c.bf16 %v3150_v53, %v3149_v50  ;;  %v3166_v50 = vld [vmem:[#allocation7 + $0x278] sm:$0xff] }
 0x2c0   :  { %3789 = vmatpush3.bf16.msra.mxu0 %v4678_v60  ;;  %v3135_v60 = vld [vmem:[#allocation7 + $0x180] sm:$0xff] }
 0x2c1   :  { %3811 = vmatpush3.bf16.msra.mxu1 %v4679_v61  ;;  %3790 = vmatprep.subr.bf16.mxu0 %v4680_v62  ;;  %v3136_v61 = vld [vmem:[#allocation7 + $0x188] sm:$0xff] }
 0x2c2   :  { %3812 = vmatprep.subr.bf16.mxu1 %v4681_v63  ;;  %v4695_v62 = vld [vmem:[#allocation6 + $0x628] ss:$20 sps:$4 sm:$0xff]   ;;  %v4131_v63 = vpack.c.bf16 %v3136_v61, %v3135_v60  ;;  %v3151_v60 = vld [vmem:[#allocation7 + $0x200] sm:$0xff] }
 0x2c3   :  { %v3152_v61 = vld [vmem:[#allocation7 + $0x208] sm:$0xff] }
 0x2c4   :  { %3791 = vmatpush3.bf16.msra.mxu0 %v4682_v1  ;;  %v3119_v1 = vld [vmem:[#allocation7 + $0x100] sm:$0xff] }
 0x2c5   :  { %3813 = vmatpush3.bf16.msra.mxu1 %v4683_v6  ;;  %3792 = vmatprep.subr.bf16.mxu0 %v4684_v7  ;;  %v3120_v6 = vld [vmem:[#allocation7 + $0x108] sm:$0xff]  ;;  %v3137_v7 = vld [vmem:[#allocation7 + $0x190] sm:$0xff] }
 0x2c6   :  { %3814 = vmatprep.subr.bf16.mxu1 %v4685_v8  ;;  %v3138_v8 = vld [vmem:[#allocation7 + $0x198] sm:$0xff]  ;;  %v4133_v9 = vpack.c.bf16 %v3120_v6, %v3119_v1 }
 0x2c7   :  { %v4135_v47 = vpack.c.bf16 %v3138_v8, %v3137_v7 }
 0x2c8   :  { %3793 = vmatpush3.bf16.msra.mxu0 %v4686_v5  ;;  %v3121_v5 = vld [vmem:[#allocation7 + $0x110] sm:$0xff] }
 0x2c9   :  { %3815 = vmatpush3.bf16.msra.mxu1 %v4687_v10  ;;  %3980 = vmatprep.subr.bf16.mxu0 %v4800_v0  ;;  %v3122_v10 = vld [vmem:[#allocation7 + $0x118] sm:$0xff] }
 0x2ca   :  { %4100 = vmatprep.subr.bf16.mxu1 %v4099_v11  ;;  %v3139_v11 = vld [vmem:[#allocation7 + $0x1a0] sm:$0xff]  ;;  %v4137_v13 = vpack.c.bf16 %v3122_v10, %v3121_v5 }
 0x2cb   :  { %2987 = vmatmul.mubr.bf16.vlgmr.msra.gmra.mrb[16].mxu0 %v4999_v27  ;;  %v3092_v27 = vld [vmem:[#allocation7 + $0x28] sm:$0xff] }
 0x2cc   :  { %3028 = vmatmul.mubr.bf16.vlgmr.msra.gmra.mrb[16].mxu1 %v5001_v28  ;;  %3981 = vmatpush3.bf16.msra.mxu0 %v4688_v14  ;;  %v4109_v28 = vpack.c.bf16 %v3092_v27, %v3091_v33  ;;  %v4139_v14 = vpack.c.bf16 %v3140_v12, %v3139_v11  ;;  %v3128_v33 = vld [vmem:[#allocation7 + $0x148] sm:$0xff]  ;;  %v3145_v27 = vld [vmem:[#allocation7 + $0x1d0] sm:$0xff] }
 0x2cd   :  { %3982 = vmatprep.subr.bf16.mxu0 %v4800_v0  ;;  %3996 = vmatprep.mubr.msk.bf16.mxu0 %vm4802_vm0, %v4800_v0 }
 0x2ce   :  { %4102 = vmatpush3.bf16.msra.mxu1 %v4101_v20  ;;  %v3142_v20 = vld [vmem:[#allocation7 + $0x1b8] sm:$0xff] }
 0x2cf   :  { %4104 = vmatprep.subr.bf16.mxu1 %v4103_v4  ;;  %v4143_v2 = vpack.c.bf16 %v3142_v20, %v3141_v18  ;;  %v3154_v20 = vld [vmem:[#allocation7 + $0x218] sm:$0xff] }
 0x2d0   :  { %3983 = vmatpush3.bf16.msra.mxu0 %v4689_v22  ;;  %v3126_v22 = vld [vmem:[#allocation7 + $0x138] sm:$0xff] }
 0x2d1   :  { %3984 = vmatprep.subr.bf16.mxu0 %v4800_v0 }
 0x2d2   :  { %4106 = vmatpush3.bf16.msra.mxu1 %v4105_v25  ;;  %v4145_v25 = vpack.c.bf16 %v3126_v22, %v3125_v21 }
 0x2d3   :  { %4108 = vmatprep.subr.bf16.mxu1 %v4107_v32  ;;  %v3127_v32 = vld [vmem:[#allocation7 + $0x140] sm:$0xff] }
 0x2d4   :  { %3985 = vmatpush3.bf16.msra.mxu0 %v4690_v34  ;;  %v3146_v34 = vld [vmem:[#allocation7 + $0x1d8] sm:$0xff]  ;;  %v4149_v35 = vpack.c.bf16 %v3128_v33, %v3127_v32  ;;  %v3155_v33 = vld [vmem:[#allocation7 + $0x220] sm:$0xff] }
 0x2d5   :  { %3986 = vmatprep.subr.bf16.mxu0 %v4800_v0  ;;  %v4151_v36 = vpack.c.bf16 %v3146_v34, %v3145_v27  ;;  %v3156_v27 = vld [vmem:[#allocation7 + $0x228] sm:$0xff] }
 0x2d6   :  { %4110 = vmatpush3.bf16.msra.mxu1 %v4109_v28  ;;  %v3129_v28 = vld [vmem:[#allocation7 + $0x150] sm:$0xff] }
 0x2d7   :  { %4112 = vmatprep.subr.bf16.mxu1 %v4111_v37  ;;  %v3130_v37 = vld [vmem:[#allocation7 + $0x158] sm:$0xff] }
 0x2d8   :  { %3987 = vmatpush3.bf16.msra.mxu0 %v4691_v40  ;;  %v4153_v40 = vpack.c.bf16 %v3130_v37, %v3129_v28  ;;  %v3157_v28 = vld [vmem:[#allocation7 + $0x230] sm:$0xff]  ;;  %v3158_v37 = vld [vmem:[#allocation7 + $0x238] sm:$0xff] }
 0x2d9   :  { %3988 = vmatprep.subr.bf16.mxu0 %v4800_v0 }
 0x2da   :  { %4114 = vmatpush3.bf16.msra.mxu1 %v4113_v43  ;;  %v4155_v43 = vpack.c.bf16 %v3148_v39, %v3147_v38  ;;  %v4175_v38 = vpack.c.bf16 %v3158_v37, %v3157_v28  ;;  %v3159_v39 = vld [vmem:[#allocation7 + $0x240] sm:$0xff] }
 0x2db   :  { %4116 = vmatprep.subr.bf16.mxu1 %v4115_v44  ;;  %v4125_v44 = vpack.c.bf16 %v3100_v42, %v3099_v41  ;;  %v3161_v42 = vld [vmem:[#allocation7 + $0x250] sm:$0xff] }
 0x2dc   :  { %3989 = vmatpush3.bf16.msra.mxu0 %v4692_v48  ;;  %v3117_v48 = vld [vmem:[#allocation7 + $0xf0] sm:$0xff] }
 0x2dd   :  { %3990 = vmatprep.subr.bf16.mxu0 %v4800_v0 }
 0x2de   :  { %4118 = vmatpush3.bf16.msra.mxu1 %v4117_v51  ;;  %v4157_v51 = vpack.c.bf16 %v3132_v46, %v3131_v45  ;;  %v3163_v45 = vld [vmem:[#allocation7 + $0x260] sm:$0xff]  ;;  %v3164_v46 = vld [vmem:[#allocation7 + $0x268] sm:$0xff] }
 0x2df   :  { %4120 = vmatprep.subr.bf16.mxu1 %v4119_v52  ;;  %v4127_v52 = vpack.c.bf16 %v3118_v49, %v3117_v48  ;;  %v4187_v48 = vpack.c.bf16 %v3164_v46, %v3163_v45  ;;  %v3165_v49 = vld [vmem:[#allocation7 + $0x270] sm:$0xff] }
 0x2e0   :  { %3991 = vmatpush3.bf16.msra.mxu0 %v4693_v54  ;;  %v3102_v54 = vld [vmem:[#allocation7 + $0x78] sm:$0xff] }
 0x2e1   :  { %3992 = vmatprep.subr.bf16.mxu0 %v4800_v0  ;;  %v4129_v55 = vpack.c.bf16 %v3102_v54, %v3101_v30 }
 0x2e2   :  { %4122 = vmatpush3.bf16.msra.mxu1 %v4121_v56  ;;  %v3133_v56 = vld [vmem:[#allocation7 + $0x170] sm:$0xff] }
 0x2e3   :  { %4124 = vmatprep.subr.bf16.mxu1 %v4123_v58  ;;  %v3134_v58 = vld [vmem:[#allocation7 + $0x178] sm:$0xff] }
 0x2e4   :  { %3993 = vmatpush3.bf16.msra.mxu0 %v4694_v59  ;;  %v4161_v59 = vpack.c.bf16 %v3134_v58, %v3133_v56 }
 0x2e5   :  { %3994 = vmatprep.subr.bf16.mxu0 %v4800_v0  ;;  %v3123_v0 = vld [vmem:[#allocation7 + $0x120] sm:$0xff] }
 0x2e6   :  { %v4141_v4 = vpack.c.bf16 %v3124_v15, %v3123_v0  ;;  %4126 = vmatpush3.bf16.msra.mxu1 %v4125_v44 }
 0x2e7   :  { %4128 = vmatprep.subr.bf16.mxu1 %v4127_v52 }
 0x2e8   :  { %3995 = vmatpush3.bf16.msra.mxu0 %v4695_v62  ;;  %v4163_v62 = vpack.c.bf16 %v3152_v61, %v3151_v60 }
 0x2e9   :  { %4132 = vmatprep.subr.bf16.mxu0 %v4131_v63  ;;  %v5043_v63 = vld [vmem:[%s5073_s7] sm:$0x1f] }
 0x2ea   :  { %4130 = vmatpush3.bf16.msra.mxu1 %v4129_v55  ;;  %v1634_v1 = vrot.slane %v5043_v63, %v4934_v17  ;;  %v1642_v6 = vrot.slane %v5043_v63, %v4951_v29  ;;  %v1638_v7 = vrot.slane %v5043_v63, %v4940_v19  ;;  %v1646_v8 = vrot.slane %v5043_v63, %v495_v3  ;;  %v3153_v29 = vld [vmem:[#allocation7 + $0x210] sm:$0xff] }
 0x2eb   :  { %3997 = vmatmul.mubr.bf16.vlgmr.msra.gmra.mrb[20].mxu0 %v5017_v26  ;;  %v4147_v26 = vpack.c.bf16 %v3144_v24, %v3143_v23  ;;  %4164 = vmatprep.subr.bf16.mxu1 %v4163_v62  ;;  %v4167_v32 = vpack.c.bf16 %v3154_v20, %v3153_v29  ;;  %v1650_v53 = vrot.slane %v5043_v63, %v499_v57 }
 0x2ec   :  { %4134 = vmatpush3.bf16.msra.mxu0 %v4133_v9 }
 0x2ed   :  { %4136 = vmatprep.subr.bf16.mxu0 %v4135_v47 }
 0x2f0   :  { %4138 = vmatpush3.bf16.msra.mxu0 %v4137_v13 }
 0x2f1   :  { %4140 = vmatprep.subr.bf16.mxu0 %v4139_v14 }
 0x2f4   :  { %4142 = vmatpush3.bf16.msra.mxu0 %v4141_v4 }
 0x2f5   :  { %4144 = vmatprep.subr.bf16.mxu0 %v4143_v2 }
 0x2f8   :  { %4146 = vmatpush3.bf16.msra.mxu0 %v4145_v25 }
 0x2f9   :  { %4148 = vmatprep.subr.bf16.mxu0 %v4147_v26 }
 0x2fc   :  { %4150 = vmatpush3.bf16.msra.mxu0 %v4149_v35 }
 0x2fd   :  { %4152 = vmatprep.subr.bf16.mxu0 %v4151_v36  ;;  %v4171_v36 = vpack.c.bf16 %v3156_v27, %v3155_v33 }
 0x300   :  { %4154 = vmatpush3.bf16.msra.mxu0 %v4153_v40  ;;  %v3160_v40 = vld [vmem:[#allocation7 + $0x248] sm:$0xff] }
 0x301   :  { %4156 = vmatprep.subr.bf16.mxu0 %v4155_v43  ;;  %v4179_v41 = vpack.c.bf16 %v3160_v40, %v3159_v39  ;;  %v3162_v43 = vld [vmem:[#allocation7 + $0x258] sm:$0xff] }
 0x302   :  { %v4183_v44 = vpack.c.bf16 %v3162_v43, %v3161_v42 }
 0x304   :  { %4158 = vmatpush3.bf16.msra.mxu0 %v4157_v51  ;;  %v4191_v51 = vpack.c.bf16 %v3166_v50, %v3165_v49 }
 0x305   :  { %4160 = vmatprep.subr.bf16.mxu0 %v4159_v31 }
 0x308   :  { %4162 = vmatpush3.bf16.msra.mxu0 %v4161_v59 }
 0x37e   :  { %v2816_v9 = vpop.f32.mrb[12].mxu0  ;;  %v2945_v47 = vpop.f32.mrb[12].mxu1 }
 0x37f   :  { %v4203_v5 = vadd.f32 %v2816_v9, %v1634_v1  ;;  %v4207_v10 = vadd.f32 %v2945_v47, %v1642_v6  ;;  %v2818_v11 = vpop.f32.mrb[13].mxu0  ;;  %v2947_v12 = vpop.f32.mrb[13].mxu1 }
 0x380   :  { %v4204_v13 = vadd.f32 %v2818_v11, %v1638_v7  ;;  %v4208_v14 = vadd.f32 %v2947_v12, %v1646_v8  ;;  %v2820_v0 = vpop.f32.mrb[14].mxu0  ;;  %v2949_v17 = vpop.f32.mrb[14].mxu1 }
 0x381   :  { %v2822_v15 = vpop.f32.mrb[15].mxu0  ;;  %v2951_v18 = vpop.f32.mrb[15].mxu1  ;;  %v3077_v22 = vmax.f32 %v4203_v5, 0.0  ;;  %v3079_v3 = vmax.f32 %v4207_v10, 0.0  ;;  %v4205_v23 = vadd.f32 %v2820_v0, %v1634_v1  ;;  %v4209_v24 = vadd.f32 %v2949_v17, %v1642_v6  ;;  %v3728_v0 = vld [vmem:[%s5075_s9] ss:$0 sm:$0xff] }
 0x382   :  { %v3078_v4 = vmax.f32 %v4204_v13, 0.0  ;;  %v3080_v19 = vmax.f32 %v4208_v14, 0.0  ;;  %v4206_v2 = vadd.f32 %v2822_v15, %v1638_v7  ;;  %v4210_v21 = vadd.f32 %v2951_v18, %v1646_v8 }
 0x383   :  { %v3082_v34 = vmax.f32 %v4205_v23, 0.0  ;;  %v3084_v35 = vmax.f32 %v4209_v24, 0.0 }
 0x384   :  { %v3083_v25 = vmax.f32 %v4206_v2, 0.0  ;;  %v3085_v26 = vmax.f32 %v4210_v21, 0.0  ;;  %3238 = vmatprep.mubr.f32.mxu1 %v3078_v4  ;;  %3313 = vmatprep.mubr.f32.mxu0 %v3080_v19 }
 0x385   :  { %3239 = vmatmul.mubr.f32.vlgmr.msra.gmra.mrb[2].mxu1 %v3077_v22  ;;  %3314 = vmatmul.mubr.f32.vlgmr.msra.gmra.mrb[24].mxu0 %v3079_v3 }
 0x386   :  { %3243 = vmatprep.mubr.f32.mxu1 %v3083_v25  ;;  %3318 = vmatprep.mubr.f32.mxu0 %v3085_v26 }
 0x387   :  { %4166 = vmatpush3.bf16.msra.mxu1 %v4163_v62 }
 0x388   :  { %4168 = vmatprep.subr.bf16.mxu1 %v4167_v32 }
 0x389   :  { %3244 = vmatmul.mubr.f32.gmra.mrb[20].mxu1 %v3082_v34  ;;  %3319 = vmatmul.mubr.f32.gmra.mrb[26].mxu0 %v3084_v35 }
 0x38b   :  { %4170 = vmatpush3.bf16.msra.mxu1 %v4167_v32 }
 0x38c   :  { %4172 = vmatprep.subr.bf16.mxu1 %v4171_v36 }
 0x38f   :  { %4174 = vmatpush3.bf16.msra.mxu1 %v4171_v36 }
 0x390   :  { %4176 = vmatprep.subr.bf16.mxu1 %v4175_v38 }
 0x393   :  { %4178 = vmatpush3.bf16.msra.mxu1 %v4175_v38 }
 0x394   :  { %4180 = vmatprep.subr.bf16.mxu1 %v4179_v41 }
 0x397   :  { %4182 = vmatpush3.bf16.msra.mxu1 %v4179_v41 }
 0x398   :  { %4184 = vmatprep.subr.bf16.mxu1 %v4183_v44 }
 0x39b   :  { %4186 = vmatpush3.bf16.msra.mxu1 %v4183_v44 }
 0x39c   :  { %4188 = vmatprep.subr.bf16.mxu1 %v4187_v48 }
 0x39e   :  { %v3794_v52 = vpop.f32.mrb[16].mxu0 }
 0x39f   :  { %v3816_v30 = vpop.f32.mrb[16].mxu1  ;;  %v3795_v54 = vpop.f32.mrb[17].mxu0  ;;  %4190 = vmatpush3.bf16.msra.mxu1 %v4187_v48 }
 0x3a0   :  { %v3796_v31 = vadd.f32 %v3795_v54, %v3794_v52  ;;  %v3817_v55 = vpop.f32.mrb[17].mxu1  ;;  %v3797_v56 = vpop.f32.mrb[18].mxu0  ;;  %4192 = vmatprep.subr.bf16.mxu1 %v4191_v51 }
 0x3a1   :  { %v3818_v58 = vadd.f32 %v3817_v55, %v3816_v30  ;;  %v3819_v59 = vpop.f32.mrb[18].mxu1  ;;  %v3798_v60 = vpop.f32.mrb[19].mxu0 }
 0x3a2   :  { %v2989_v61 = vadd.f32 %v3796_v31, %v1650_v53  ;;  %v3799_v62 = vadd.f32 %v3798_v60, %v3797_v56  ;;  %v3820_v1 = vpop.f32.mrb[19].mxu1 }
 0x3a3   :  { %v3821_v6 = vadd.f32 %v3820_v1, %v3819_v59  ;;  %4194 = vmatpush3.bf16.msra.mxu1 %v4191_v51 }
 0x3a4   :  { %v2992_v7 = vadd.f32 %v3799_v62, %v1650_v53  ;;  %v3030_v8 = vadd.f32 %v3818_v58, %v2989_v61 }
 0x3a6   :  { %v3033_v16 = vadd.f32 %v3821_v6, %v2992_v7 }
 0x3be   :  { %v3070_v9 = vpop.f32.mrb[20].mxu0 }
 0x3bf   :  { %v3071_v57 = vadd.f32 %v3070_v9, %v3030_v8  ;;  %v3998_v63 = vpop.f32.mrb[21].mxu0 }
 0x3c0   :  { %v3073_v47 = vpop.f32.mrb[22].mxu0 }
 0x3c1   :  { %v3081_v5 = vmax.f32 %v3071_v57, 0.0  ;;  %v3074_v10 = vadd.f32 %v3073_v47, %v3033_v16  ;;  %v3999_v11 = vpop.f32.mrb[23].mxu0 }
 0x3c3   :  { %v3086_v12 = vmax.f32 %v3074_v10, 0.0  ;;  %4032 = vmatprep.mubr.f32.mxu1 %v3081_v5 }
 0x3c5   :  { %4033 = vmatmul.mubr.f32.vlgmr.msra.gmra.mrb[22].mxu1 %v3086_v12 }
 0x458   :  { %v3863_v13 = vpop.f32.mrb[2].mxu1  ;;  %v3901_v14 = vpop.f32.mrb[24].mxu0 }
 0x459   :  { %v3864_v17 = vpop.f32.mrb[3].mxu1  ;;  %v3902_v15 = vpop.f32.mrb[25].mxu0 }
 0x45a   :  { %v3865_v18 = vadd.f32 %v3864_v17, %v3863_v13  ;;  %v3903_v29 = vadd.f32 %v3902_v15, %v3901_v14 }
 0x45c   :  { %v3241_v20 = vadd.f32 %v3865_v18, %v3728_v0  ;;  %v3866_v4 = vpop.f32.mrb[20].mxu1  ;;  %v3904_v19 = vpop.f32.mrb[26].mxu0 }
 0x45d   :  { %v3867_v2 = vpop.f32.mrb[21].mxu1  ;;  %v3905_v21 = vpop.f32.mrb[27].mxu0 }
 0x45e   :  { %v3868_v22 = vadd.f32 %v3867_v2, %v3866_v4  ;;  %v3906_v3 = vadd.f32 %v3905_v21, %v3904_v19  ;;  %v3316_v23 = vadd.f32 %v3903_v29, %v3241_v20 }
 0x460   :  { %v3246_v24 = vadd.f32 %v3868_v22, %v3728_v0 }
 0x462   :  { %v3321_v25 = vadd.f32 %v3906_v3, %v3246_v24 }
 0x498   :  { %v4034_v26 = vpop.f32.mrb[22].mxu1 }
 0x499   :  { %v3396_v32 = vadd.f32 %v4034_v26, %v3321_v25  ;;  %v3390_v33 = vpop.f32.mrb[23].mxu1 }
 0x49a   :  { %v3391_v27 = vadd.f32 %v3390_v33, %v3316_v23 }
 0x49b   :  { %3400 = vst [vmem:[%s5076_s10 + $0x8] sm:$0xff] %v3396_v32 }
 0x49c   :  { %3399 = vst [vmem:[%s5076_s10] sm:$0xff] %v3391_v27 }
 0x49d   :  { %3405 = vsyncpa [#allocation3], 1 }
 0x49e   :  { %3406 = vsyncpa [#allocation5], 1 }
 0x49f   :  { %3407 = vsyncpa [#allocation8], 1 }

</bundles_post_ra>
